<compile_context>
chip_gen: v6e
topology: v6e:2x2x1
jax: 0.10.0
libtpu: 0.0.40
codegen_flags: <defaults>
</compile_context>

<pallas_src>
import functools
import math

import jax
import jax.numpy as jnp
from jax.experimental import pallas as pl
from jax.experimental.pallas import tpu as pltpu


_VMEM = pl.BlockSpec(memory_space=pltpu.MemorySpace.VMEM)
_EPS = 1e-5
_LANE = 128          # lane-dense padding of the final projection output


def _ln_f32(x, g, b, eps):
    """Row-wise LayerNorm in f32 (VPU math stays f32, v5e-friendly)."""
    x = x.astype(jnp.float32)
    mean = jnp.mean(x, axis=-1, keepdims=True)
    var = jnp.mean(jnp.square(x - mean), axis=-1, keepdims=True)
    return (x - mean) * jax.lax.rsqrt(var + eps) * g + b


def _bf16(x):
    return x.astype(jnp.bfloat16)


# ----------------------------- fused forward kernel -----------------------------

def _clip_fwd_kernel(patch_ref, pw_ref, cls_ref, pos_ref, lpreg_ref, lpreb_ref,
                     mask_ref,
                     ln1g_ref, ln1b_ref, win_ref, bin_ref, wout_ref, bout_ref,
                     ln2g_ref, ln2b_ref, wfc1_ref, bfc1_ref, wfc2_ref, bfc2_ref,
                     lpostg_ref, lpostb_ref, proj_ref, o_ref,
                     *, B, N, D, H, L, eps):
    S = N + 1
    Dh = D // H
    scale = 1.0 / math.sqrt(Dh)

    # ---- embed: patch matmul (bf16 MXU) + CLS prepend + pos add + ln_pre ----
    # conv1 (stride == kernel == patch, bias=False) lowered to one matmul.
    pe = jnp.dot(_bf16(patch_ref[...]), pw_ref[...],
                 preferred_element_type=jnp.float32)            # (B*N, D) f32
    pos = pos_ref[...]                                          # (S, D) f32
    cls_tok = cls_ref[...] + pos[0:1, :]                        # (1, D)
    pos_patch = pos[1:, :]                                      # (N, D)
    rows = []
    for b in range(B):                                          # static, tiny B
        rows.append(cls_tok)
        rows.append(pe[b * N:(b + 1) * N, :] + pos_patch)
    x = jnp.concatenate(rows, axis=0)                           # (B*S, D)
    x = _ln_f32(x, lpreg_ref[...], lpreb_ref[...], eps)

    # additive block-diagonal mask: batch folded into token axis, no grid.
    mask = mask_ref[...]                                        # (B*S, B*S) f32

    # ---- transformer: loop layers over stacked per-layer weights in VMEM ----
    def layer(l, x):
        # attention: LN1 -> QKV -> per-head softmax(qk^T)v -> out-proj -> +res
        h = _ln_f32(x, ln1g_ref[l], ln1b_ref[l], eps)
        qkv = jnp.dot(_bf16(h), win_ref[l],
                      preferred_element_type=jnp.float32) + bin_ref[l]  # (B*S,3D)
        heads = []
        for hd in range(H):                                     # static unroll
            # TODO(synk): at production sizes (Dh=64, S=257) move heads to a
            # grid axis / batched matmuls instead of lane-slicing here.
            q = qkv[:, hd * Dh:(hd + 1) * Dh] * scale           # scale folded into q
            k = qkv[:, D + hd * Dh:D + (hd + 1) * Dh]
            v = qkv[:, 2 * D + hd * Dh:2 * D + (hd + 1) * Dh]
            s = jnp.einsum("qd,kd->qk", _bf16(q), _bf16(k),
                           preferred_element_type=jnp.float32) + mask
            s = s - jnp.max(s, axis=-1, keepdims=True)
            p = jnp.exp(s)                                      # f32 softmax
            p = p * pl.reciprocal(jnp.sum(p, axis=-1, keepdims=True), approx=True)
            heads.append(jnp.dot(_bf16(p), _bf16(v),
                                 preferred_element_type=jnp.float32))   # (B*S,Dh)
        attn = jnp.concatenate(heads, axis=-1)                          # (B*S, D)
        o = jnp.dot(_bf16(attn), wout_ref[l],
                    preferred_element_type=jnp.float32) + bout_ref[l]
        x = x + o                                               # fused residual

        # MLP: LN2 -> FC1 + QuickGELU -> FC2 -> +residual
        h = _ln_f32(x, ln2g_ref[l], ln2b_ref[l], eps)
        h = jnp.dot(_bf16(h), wfc1_ref[l],
                    preferred_element_type=jnp.float32) + bfc1_ref[l]
        h = h * jax.nn.sigmoid(1.702 * h)                       # QuickGELU, f32
        h = jnp.dot(_bf16(h), wfc2_ref[l],
                    preferred_element_type=jnp.float32) + bfc2_ref[l]
        return x + h

    x = jax.lax.fori_loop(0, L, layer, x, unroll=True)

    # ---- head: CLS rows -> ln_post -> projection (lane-padded, full store) ----
    cls_rows = jnp.concatenate([x[b * S:b * S + 1, :] for b in range(B)], axis=0)
    cls_rows = _ln_f32(cls_rows, lpostg_ref[...], lpostb_ref[...], eps)
    o_ref[...] = jnp.dot(_bf16(cls_rows), proj_ref[...],
                         preferred_element_type=jnp.float32).astype(o_ref.dtype)


# ----------------------------- model definition -----------------------------

CFG = dict(
    in_channels=3,
    image_size=16,
    patch_size=8,
    width=32,        # transformer hidden dim
    heads=4,
    layers=2,
    output_dim=16,   # CLIP embed_dim (image projection output)
)


def init_params(key, cfg):
    C, P, D, L = cfg["in_channels"], cfg["patch_size"], cfg["width"], cfg["layers"]
    S = (cfg["image_size"] // P) ** 2 + 1
    std = 0.02

    def nrm(k, shape, dtype=jnp.bfloat16):       # weights at rest in bf16
        return (std * jax.random.normal(k, shape)).astype(dtype)

    ks = list(jax.random.split(key, 12))
    proj = nrm(ks[3], (D, cfg["output_dim"]))
    proj_pad = jnp.zeros((D, _LANE), jnp.bfloat16).at[:, :cfg["output_dim"]].set(proj)

    # NOTE: linear weights are stored transposed relative to torch
    # (in_proj_weight etc.); a real CLIP checkpoint must be transposed on load.
    return {
        "patch_w": nrm(ks[0], (C * P * P, D)),                  # conv1, bias=False
        "class_embedding": nrm(ks[1], (1, D), jnp.float32),
        "pos_embedding": nrm(ks[2], (S, D), jnp.float32),
        "ln_pre_g": jnp.ones((1, D), jnp.float32),
        "ln_pre_b": jnp.zeros((1, D), jnp.float32),
        "ln_post_g": jnp.ones((1, D), jnp.float32),
        "ln_post_b": jnp.zeros((1, D), jnp.float32),
        "proj_pad": proj_pad,                                   # (D, 128), no bias
        # stacked per-layer weights (leading layer axis), bf16 at rest
        "ln1_g": jnp.ones((L, 1, D), jnp.float32),
        "ln1_b": jnp.zeros((L, 1, D), jnp.float32),
        "w_in": nrm(ks[4], (L, D, 3 * D)),
        "b_in": (std * jax.random.normal(ks[5], (L, 1, 3 * D))).astype(jnp.float32),
        "w_out": nrm(ks[6], (L, D, D)),
        "b_out": (std * jax.random.normal(ks[7], (L, 1, D))).astype(jnp.float32),
        "ln2_g": jnp.ones((L, 1, D), jnp.float32),
        "ln2_b": jnp.zeros((L, 1, D), jnp.float32),
        "w_fc1": nrm(ks[8], (L, D, 4 * D)),
        "b_fc1": (std * jax.random.normal(ks[9], (L, 1, 4 * D))).astype(jnp.float32),
        "w_fc2": nrm(ks[10], (L, 4 * D, D)),
        "b_fc2": (std * jax.random.normal(ks[11], (L, 1, D))).astype(jnp.float32),
    }


def encode_image(params, image, cfg):
    """CLIP VisualTransformer.forward == ImageCLIP.forward (single pallas_call)."""
    B, C, Himg, Wimg = image.shape
    P, D, H, L = cfg["patch_size"], cfg["width"], cfg["heads"], cfg["layers"]
    gh, gw = Himg // P, Wimg // P
    N = gh * gw
    S = N + 1

    # im2col for the stride==kernel conv1 (pure layout plumbing, stays in XLA).
    patches = image.reshape(B, C, gh, P, gw, P)
    patches = patches.transpose(0, 2, 4, 1, 3, 5).reshape(B * N, C * P * P)

    # block-diagonal additive mask: batch lives on the token axis in-kernel.
    ids = jnp.arange(B * S, dtype=jnp.int32) // S
    mask = jnp.where(ids[:, None] == ids[None, :], 0.0, -1e30).astype(jnp.float32)

    out_pad = pl.pallas_call(
        functools.partial(_clip_fwd_kernel, B=B, N=N, D=D, H=H, L=L, eps=_EPS),
        out_shape=jax.ShapeDtypeStruct((B, _LANE), jnp.float32),
        in_specs=[_VMEM] * 22,
        out_specs=_VMEM,
    )(patches, params["patch_w"], params["class_embedding"],
      params["pos_embedding"], params["ln_pre_g"], params["ln_pre_b"], mask,
      params["ln1_g"], params["ln1_b"], params["w_in"], params["b_in"],
      params["w_out"], params["b_out"], params["ln2_g"], params["ln2_b"],
      params["w_fc1"], params["b_fc1"], params["w_fc2"], params["b_fc2"],
      params["ln_post_g"], params["ln_post_b"], params["proj_pad"])

    # unpad the lane-dense (B, 128) store back to (B, output_dim).
    return out_pad[:, :cfg["output_dim"]]


# TODO(synk): the wrapped `model` in ImageCLIP is unspecified at __init__; a
# standard CLIP ViT visual encoder is instantiated here with synthetic weights.

if __name__ == "__main__":
    key = jax.random.PRNGKey(0)
    pkey, ikey = jax.random.split(key)
    params = init_params(pkey, CFG)

    image = jax.random.normal(
        ikey, (2, CFG["in_channels"], CFG["image_size"], CFG["image_size"]),
        dtype=jnp.float32)                                      # NCHW, like torch

    fwd = jax.jit(lambda p, img: encode_image(p, img, CFG))
    out = jax.block_until_ready(fwd(params, image))
    assert out.shape == (2, CFG["output_dim"])
    assert bool(jnp.all(jnp.isfinite(out)))
    print("KERNEL_OK")
</pallas_src>

<mosaic_0001>
module attributes {stable_mosaic.version = 11 : i64} {
  func.func @_clip_fwd_kernel(%arg0: memref<8x192xf32, #tpu.memory_space<vmem>>, %arg1: memref<192x32xbf16, #tpu.memory_space<vmem>>, %arg2: memref<1x32xf32, #tpu.memory_space<vmem>>, %arg3: memref<5x32xf32, #tpu.memory_space<vmem>>, %arg4: memref<1x32xf32, #tpu.memory_space<vmem>>, %arg5: memref<1x32xf32, #tpu.memory_space<vmem>>, %arg6: memref<10x10xf32, #tpu.memory_space<vmem>>, %arg7: memref<2x1x32xf32, #tpu.memory_space<vmem>>, %arg8: memref<2x1x32xf32, #tpu.memory_space<vmem>>, %arg9: memref<2x32x96xbf16, #tpu.memory_space<vmem>>, %arg10: memref<2x1x96xf32, #tpu.memory_space<vmem>>, %arg11: memref<2x32x32xbf16, #tpu.memory_space<vmem>>, %arg12: memref<2x1x32xf32, #tpu.memory_space<vmem>>, %arg13: memref<2x1x32xf32, #tpu.memory_space<vmem>>, %arg14: memref<2x1x32xf32, #tpu.memory_space<vmem>>, %arg15: memref<2x32x128xbf16, #tpu.memory_space<vmem>>, %arg16: memref<2x1x128xf32, #tpu.memory_space<vmem>>, %arg17: memref<2x128x32xbf16, #tpu.memory_space<vmem>>, %arg18: memref<2x1x32xf32, #tpu.memory_space<vmem>>, %arg19: memref<1x32xf32, #tpu.memory_space<vmem>>, %arg20: memref<1x32xf32, #tpu.memory_space<vmem>>, %arg21: memref<32x128xbf16, #tpu.memory_space<vmem>>, %arg22: memref<2x128xf32, #tpu.memory_space<vmem>>) attributes {dimension_semantics = [], scalar_prefetch = 0 : i64, scratch_operands = 0 : i64, tpu.core_type = #tpu.core_type<tc>} {
    %c0 = arith.constant 0 : index
    %c0_0 = arith.constant 0 : index
    %0 = vector.load %arg0[%c0, %c0_0] : memref<8x192xf32, #tpu.memory_space<vmem>>, vector<8x192xf32>
    %1 = arith.truncf %0 : vector<8x192xf32> to vector<8x192xbf16>
    %c0_1 = arith.constant 0 : index
    %c0_2 = arith.constant 0 : index
    %2 = vector.load %arg1[%c0_1, %c0_2] : memref<192x32xbf16, #tpu.memory_space<vmem>>, vector<192x32xbf16>
    %cst = arith.constant dense<0.000000e+00> : vector<8x32xf32>
    %3 = tpu.matmul %1, %2, %cst {dimension_numbers = #tpu.dot_dimension_numbers<[1], [0], [0], [1], [0, 0, 1, 1], [], []>} : vector<8x192xbf16>, vector<192x32xbf16>, vector<8x32xf32> -> vector<8x32xf32>
    %c0_3 = arith.constant 0 : index
    %c0_4 = arith.constant 0 : index
    %4 = vector.load %arg3[%c0_3, %c0_4] : memref<5x32xf32, #tpu.memory_space<vmem>>, vector<5x32xf32>
    %c0_5 = arith.constant 0 : index
    %c0_6 = arith.constant 0 : index
    %5 = vector.load %arg2[%c0_5, %c0_6] : memref<1x32xf32, #tpu.memory_space<vmem>>, vector<1x32xf32>
    %6 = vector.extract_strided_slice %4 {offsets = [0, 0], sizes = [1, 32], strides = [1, 1]} : vector<5x32xf32> to vector<1x32xf32>
    %7 = arith.addf %5, %6 : vector<1x32xf32>
    %8 = vector.extract_strided_slice %4 {offsets = [1, 0], sizes = [4, 32], strides = [1, 1]} : vector<5x32xf32> to vector<4x32xf32>
    %9 = vector.extract_strided_slice %3 {offsets = [0, 0], sizes = [4, 32], strides = [1, 1]} : vector<8x32xf32> to vector<4x32xf32>
    %10 = arith.addf %9, %8 : vector<4x32xf32>
    %11 = vector.extract_strided_slice %3 {offsets = [4, 0], sizes = [4, 32], strides = [1, 1]} : vector<8x32xf32> to vector<4x32xf32>
    %12 = arith.addf %11, %8 : vector<4x32xf32>
    %13 = tpu.concatenate %7, %10, %7, %12 in 0 : vector<1x32xf32>, vector<4x32xf32>, vector<1x32xf32>, vector<4x32xf32> -> vector<10x32xf32>
    %c0_7 = arith.constant 0 : index
    %c0_8 = arith.constant 0 : index
    %14 = vector.load %arg4[%c0_7, %c0_8] : memref<1x32xf32, #tpu.memory_space<vmem>>, vector<1x32xf32>
    %c0_9 = arith.constant 0 : index
    %c0_10 = arith.constant 0 : index
    %15 = vector.load %arg5[%c0_9, %c0_10] : memref<1x32xf32, #tpu.memory_space<vmem>>, vector<1x32xf32>
    %cst_11 = arith.constant dense<0.000000e+00> : vector<10xf32>
    %16 = vector.multi_reduction <add>, %13, %cst_11 [1] : vector<10x32xf32> to vector<10xf32>
    %17 = vector.shape_cast %16 : vector<10xf32> to vector<10x1xf32>
    %cst_12 = arith.constant 3.200000e+01 : f32
    %18 = vector.broadcast %cst_12 : f32 to vector<10x1xf32>
    %19 = arith.divf %17, %18 : vector<10x1xf32>
    %20 = vector.broadcast %19 : vector<10x1xf32> to vector<10x32xf32>
    %21 = arith.subf %13, %20 : vector<10x32xf32>
    %22 = arith.mulf %21, %21 : vector<10x32xf32>
    %cst_13 = arith.constant dense<0.000000e+00> : vector<10xf32>
    %23 = vector.multi_reduction <add>, %22, %cst_13 [1] : vector<10x32xf32> to vector<10xf32>
    %24 = vector.shape_cast %23 : vector<10xf32> to vector<10x1xf32>
    %cst_14 = arith.constant 3.200000e+01 : f32
    %25 = vector.broadcast %cst_14 : f32 to vector<10x1xf32>
    %26 = arith.divf %24, %25 : vector<10x1xf32>
    %27 = vector.broadcast %19 : vector<10x1xf32> to vector<10x32xf32>
    %28 = arith.subf %13, %27 : vector<10x32xf32>
    %cst_15 = arith.constant 9.99999974E-6 : f32
    %29 = vector.broadcast %cst_15 : f32 to vector<10x1xf32>
    %30 = arith.addf %26, %29 : vector<10x1xf32>
    %31 = math.rsqrt %30 : vector<10x1xf32>
    %32 = vector.broadcast %31 : vector<10x1xf32> to vector<10x32xf32>
    %33 = arith.mulf %28, %32 : vector<10x32xf32>
    %34 = vector.broadcast %14 : vector<1x32xf32> to vector<10x32xf32>
    %35 = arith.mulf %33, %34 : vector<10x32xf32>
    %36 = vector.broadcast %15 : vector<1x32xf32> to vector<10x32xf32>
    %37 = arith.addf %35, %36 : vector<10x32xf32>
    %c0_16 = arith.constant 0 : index
    %c0_17 = arith.constant 0 : index
    %38 = vector.load %arg6[%c0_16, %c0_17] : memref<10x10xf32, #tpu.memory_space<vmem>>, vector<10x10xf32>
    %c0_i32 = arith.constant 0 : i32
    %39 = arith.index_cast %c0_i32 : i32 to index
    %c0_18 = arith.constant 0 : index
    %c0_19 = arith.constant 0 : index
    %40 = vector.load %arg7[%39, %c0_18, %c0_19] : memref<2x1x32xf32, #tpu.memory_space<vmem>>, vector<1x1x32xf32>
    %41 = vector.shape_cast %40 : vector<1x1x32xf32> to vector<1x32xf32>
    %42 = arith.index_cast %c0_i32 : i32 to index
    %c0_20 = arith.constant 0 : index
    %c0_21 = arith.constant 0 : index
    %43 = vector.load %arg8[%42, %c0_20, %c0_21] : memref<2x1x32xf32, #tpu.memory_space<vmem>>, vector<1x1x32xf32>
    %44 = vector.shape_cast %43 : vector<1x1x32xf32> to vector<1x32xf32>
    %cst_22 = arith.constant dense<0.000000e+00> : vector<10xf32>
    %45 = vector.multi_reduction <add>, %37, %cst_22 [1] : vector<10x32xf32> to vector<10xf32>
    %46 = vector.shape_cast %45 : vector<10xf32> to vector<10x1xf32>
    %cst_23 = arith.constant 3.200000e+01 : f32
    %47 = vector.broadcast %cst_23 : f32 to vector<10x1xf32>
    %48 = arith.divf %46, %47 : vector<10x1xf32>
    %49 = vector.broadcast %48 : vector<10x1xf32> to vector<10x32xf32>
    %50 = arith.subf %37, %49 : vector<10x32xf32>
    %51 = arith.mulf %50, %50 : vector<10x32xf32>
    %cst_24 = arith.constant dense<0.000000e+00> : vector<10xf32>
    %52 = vector.multi_reduction <add>, %51, %cst_24 [1] : vector<10x32xf32> to vector<10xf32>
    %53 = vector.shape_cast %52 : vector<10xf32> to vector<10x1xf32>
    %cst_25 = arith.constant 3.200000e+01 : f32
    %54 = vector.broadcast %cst_25 : f32 to vector<10x1xf32>
    %55 = arith.divf %53, %54 : vector<10x1xf32>
    %56 = vector.broadcast %48 : vector<10x1xf32> to vector<10x32xf32>
    %57 = arith.subf %37, %56 : vector<10x32xf32>
    %cst_26 = arith.constant 9.99999974E-6 : f32
    %58 = vector.broadcast %cst_26 : f32 to vector<10x1xf32>
    %59 = arith.addf %55, %58 : vector<10x1xf32>
    %60 = math.rsqrt %59 : vector<10x1xf32>
    %61 = vector.broadcast %60 : vector<10x1xf32> to vector<10x32xf32>
    %62 = arith.mulf %57, %61 : vector<10x32xf32>
    %63 = vector.broadcast %41 : vector<1x32xf32> to vector<10x32xf32>
    %64 = arith.mulf %62, %63 : vector<10x32xf32>
    %65 = vector.broadcast %44 : vector<1x32xf32> to vector<10x32xf32>
    %66 = arith.addf %64, %65 : vector<10x32xf32>
    %67 = arith.truncf %66 : vector<10x32xf32> to vector<10x32xbf16>
    %68 = arith.index_cast %c0_i32 : i32 to index
    %c0_27 = arith.constant 0 : index
    %c0_28 = arith.constant 0 : index
    %69 = vector.load %arg9[%68, %c0_27, %c0_28] : memref<2x32x96xbf16, #tpu.memory_space<vmem>>, vector<1x32x96xbf16>
    %70 = vector.shape_cast %69 : vector<1x32x96xbf16> to vector<32x96xbf16>
    %cst_29 = arith.constant dense<0.000000e+00> : vector<10x96xf32>
    %71 = tpu.matmul %67, %70, %cst_29 {dimension_numbers = #tpu.dot_dimension_numbers<[1], [0], [0], [1], [0, 0, 1, 1], [], []>} : vector<10x32xbf16>, vector<32x96xbf16>, vector<10x96xf32> -> vector<10x96xf32>
    %72 = arith.index_cast %c0_i32 : i32 to index
    %c0_30 = arith.constant 0 : index
    %c0_31 = arith.constant 0 : index
    %73 = vector.load %arg10[%72, %c0_30, %c0_31] : memref<2x1x96xf32, #tpu.memory_space<vmem>>, vector<1x1x96xf32>
    %74 = vector.shape_cast %73 : vector<1x1x96xf32> to vector<1x96xf32>
    %75 = vector.broadcast %74 : vector<1x96xf32> to vector<10x96xf32>
    %76 = arith.addf %71, %75 : vector<10x96xf32>
    %77 = vector.extract_strided_slice %76 {offsets = [0, 0], sizes = [10, 8], strides = [1, 1]} : vector<10x96xf32> to vector<10x8xf32>
    %cst_32 = arith.constant 0.353553385 : f32
    %78 = vector.broadcast %cst_32 : f32 to vector<10x8xf32>
    %79 = arith.mulf %77, %78 : vector<10x8xf32>
    %80 = vector.extract_strided_slice %76 {offsets = [0, 32], sizes = [10, 8], strides = [1, 1]} : vector<10x96xf32> to vector<10x8xf32>
    %81 = vector.extract_strided_slice %76 {offsets = [0, 64], sizes = [10, 8], strides = [1, 1]} : vector<10x96xf32> to vector<10x8xf32>
    %82 = arith.truncf %79 : vector<10x8xf32> to vector<10x8xbf16>
    %83 = arith.truncf %80 : vector<10x8xf32> to vector<10x8xbf16>
    "tpu.trace_start"() <{level = 10 : i32, message = "qd,kd->qk"}> : () -> ()
    %cst_33 = arith.constant dense<0.000000e+00> : vector<10x10xf32>
    %84 = tpu.matmul %82, %83, %cst_33 {dimension_numbers = #tpu.dot_dimension_numbers<[1], [1], [0], [0], [0, 0, 1, 0], [], []>} : vector<10x8xbf16>, vector<10x8xbf16>, vector<10x10xf32> -> vector<10x10xf32>
    "tpu.trace_stop"() : () -> ()
    %85 = arith.addf %84, %38 : vector<10x10xf32>
    %cst_34 = arith.constant dense<0xFF800000> : vector<10xf32>
    %86 = vector.multi_reduction <maximumf>, %85, %cst_34 [1] : vector<10x10xf32> to vector<10xf32>
    %87 = vector.shape_cast %86 : vector<10xf32> to vector<10x1xf32>
    %88 = vector.broadcast %87 : vector<10x1xf32> to vector<10x10xf32>
    %89 = arith.subf %85, %88 : vector<10x10xf32>
    %90 = math.exp %89 : vector<10x10xf32>
    %cst_35 = arith.constant dense<0.000000e+00> : vector<10xf32>
    %91 = vector.multi_reduction <add>, %90, %cst_35 [1] : vector<10x10xf32> to vector<10xf32>
    %92 = vector.shape_cast %91 : vector<10xf32> to vector<10x1xf32>
    %93 = tpu.reciprocal %92 {approx = true} : vector<10x1xf32> -> vector<10x1xf32>
    %94 = vector.broadcast %93 : vector<10x1xf32> to vector<10x10xf32>
    %95 = arith.mulf %90, %94 : vector<10x10xf32>
    %96 = arith.truncf %95 : vector<10x10xf32> to vector<10x10xbf16>
    %97 = arith.truncf %81 : vector<10x8xf32> to vector<10x8xbf16>
    %cst_36 = arith.constant dense<0.000000e+00> : vector<10x8xf32>
    %98 = tpu.matmul %96, %97, %cst_36 {dimension_numbers = #tpu.dot_dimension_numbers<[1], [0], [0], [1], [0, 0, 1, 1], [], []>} : vector<10x10xbf16>, vector<10x8xbf16>, vector<10x8xf32> -> vector<10x8xf32>
    %99 = vector.extract_strided_slice %76 {offsets = [0, 8], sizes = [10, 8], strides = [1, 1]} : vector<10x96xf32> to vector<10x8xf32>
    %cst_37 = arith.constant 0.353553385 : f32
    %100 = vector.broadcast %cst_37 : f32 to vector<10x8xf32>
    %101 = arith.mulf %99, %100 : vector<10x8xf32>
    %102 = vector.extract_strided_slice %76 {offsets = [0, 40], sizes = [10, 8], strides = [1, 1]} : vector<10x96xf32> to vector<10x8xf32>
    %103 = vector.extract_strided_slice %76 {offsets = [0, 72], sizes = [10, 8], strides = [1, 1]} : vector<10x96xf32> to vector<10x8xf32>
    %104 = arith.truncf %101 : vector<10x8xf32> to vector<10x8xbf16>
    %105 = arith.truncf %102 : vector<10x8xf32> to vector<10x8xbf16>
    "tpu.trace_start"() <{level = 10 : i32, message = "qd,kd->qk"}> : () -> ()
    %cst_38 = arith.constant dense<0.000000e+00> : vector<10x10xf32>
    %106 = tpu.matmul %104, %105, %cst_38 {dimension_numbers = #tpu.dot_dimension_numbers<[1], [1], [0], [0], [0, 0, 1, 0], [], []>} : vector<10x8xbf16>, vector<10x8xbf16>, vector<10x10xf32> -> vector<10x10xf32>
    "tpu.trace_stop"() : () -> ()
    %107 = arith.addf %106, %38 : vector<10x10xf32>
    %cst_39 = arith.constant dense<0xFF800000> : vector<10xf32>
    %108 = vector.multi_reduction <maximumf>, %107, %cst_39 [1] : vector<10x10xf32> to vector<10xf32>
    %109 = vector.shape_cast %108 : vector<10xf32> to vector<10x1xf32>
    %110 = vector.broadcast %109 : vector<10x1xf32> to vector<10x10xf32>
    %111 = arith.subf %107, %110 : vector<10x10xf32>
    %112 = math.exp %111 : vector<10x10xf32>
    %cst_40 = arith.constant dense<0.000000e+00> : vector<10xf32>
    %113 = vector.multi_reduction <add>, %112, %cst_40 [1] : vector<10x10xf32> to vector<10xf32>
    %114 = vector.shape_cast %113 : vector<10xf32> to vector<10x1xf32>
    %115 = tpu.reciprocal %114 {approx = true} : vector<10x1xf32> -> vector<10x1xf32>
    %116 = vector.broadcast %115 : vector<10x1xf32> to vector<10x10xf32>
    %117 = arith.mulf %112, %116 : vector<10x10xf32>
    %118 = arith.truncf %117 : vector<10x10xf32> to vector<10x10xbf16>
    %119 = arith.truncf %103 : vector<10x8xf32> to vector<10x8xbf16>
    %cst_41 = arith.constant dense<0.000000e+00> : vector<10x8xf32>
    %120 = tpu.matmul %118, %119, %cst_41 {dimension_numbers = #tpu.dot_dimension_numbers<[1], [0], [0], [1], [0, 0, 1, 1], [], []>} : vector<10x10xbf16>, vector<10x8xbf16>, vector<10x8xf32> -> vector<10x8xf32>
    %121 = vector.extract_strided_slice %76 {offsets = [0, 16], sizes = [10, 8], strides = [1, 1]} : vector<10x96xf32> to vector<10x8xf32>
    %cst_42 = arith.constant 0.353553385 : f32
    %122 = vector.broadcast %cst_42 : f32 to vector<10x8xf32>
    %123 = arith.mulf %121, %122 : vector<10x8xf32>
    %124 = vector.extract_strided_slice %76 {offsets = [0, 48], sizes = [10, 8], strides = [1, 1]} : vector<10x96xf32> to vector<10x8xf32>
    %125 = vector.extract_strided_slice %76 {offsets = [0, 80], sizes = [10, 8], strides = [1, 1]} : vector<10x96xf32> to vector<10x8xf32>
    %126 = arith.truncf %123 : vector<10x8xf32> to vector<10x8xbf16>
    %127 = arith.truncf %124 : vector<10x8xf32> to vector<10x8xbf16>
    "tpu.trace_start"() <{level = 10 : i32, message = "qd,kd->qk"}> : () -> ()
    %cst_43 = arith.constant dense<0.000000e+00> : vector<10x10xf32>
    %128 = tpu.matmul %126, %127, %cst_43 {dimension_numbers = #tpu.dot_dimension_numbers<[1], [1], [0], [0], [0, 0, 1, 0], [], []>} : vector<10x8xbf16>, vector<10x8xbf16>, vector<10x10xf32> -> vector<10x10xf32>
    "tpu.trace_stop"() : () -> ()
    %129 = arith.addf %128, %38 : vector<10x10xf32>
    %cst_44 = arith.constant dense<0xFF800000> : vector<10xf32>
    %130 = vector.multi_reduction <maximumf>, %129, %cst_44 [1] : vector<10x10xf32> to vector<10xf32>
    %131 = vector.shape_cast %130 : vector<10xf32> to vector<10x1xf32>
    %132 = vector.broadcast %131 : vector<10x1xf32> to vector<10x10xf32>
    %133 = arith.subf %129, %132 : vector<10x10xf32>
    %134 = math.exp %133 : vector<10x10xf32>
    %cst_45 = arith.constant dense<0.000000e+00> : vector<10xf32>
    %135 = vector.multi_reduction <add>, %134, %cst_45 [1] : vector<10x10xf32> to vector<10xf32>
    %136 = vector.shape_cast %135 : vector<10xf32> to vector<10x1xf32>
    %137 = tpu.reciprocal %136 {approx = true} : vector<10x1xf32> -> vector<10x1xf32>
    %138 = vector.broadcast %137 : vector<10x1xf32> to vector<10x10xf32>
    %139 = arith.mulf %134, %138 : vector<10x10xf32>
    %140 = arith.truncf %139 : vector<10x10xf32> to vector<10x10xbf16>
    %141 = arith.truncf %125 : vector<10x8xf32> to vector<10x8xbf16>
    %cst_46 = arith.constant dense<0.000000e+00> : vector<10x8xf32>
    %142 = tpu.matmul %140, %141, %cst_46 {dimension_numbers = #tpu.dot_dimension_numbers<[1], [0], [0], [1], [0, 0, 1, 1], [], []>} : vector<10x10xbf16>, vector<10x8xbf16>, vector<10x8xf32> -> vector<10x8xf32>
    %143 = vector.extract_strided_slice %76 {offsets = [0, 24], sizes = [10, 8], strides = [1, 1]} : vector<10x96xf32> to vector<10x8xf32>
    %cst_47 = arith.constant 0.353553385 : f32
    %144 = vector.broadcast %cst_47 : f32 to vector<10x8xf32>
    %145 = arith.mulf %143, %144 : vector<10x8xf32>
    %146 = vector.extract_strided_slice %76 {offsets = [0, 56], sizes = [10, 8], strides = [1, 1]} : vector<10x96xf32> to vector<10x8xf32>
    %147 = vector.extract_strided_slice %76 {offsets = [0, 88], sizes = [10, 8], strides = [1, 1]} : vector<10x96xf32> to vector<10x8xf32>
    %148 = arith.truncf %145 : vector<10x8xf32> to vector<10x8xbf16>
    %149 = arith.truncf %146 : vector<10x8xf32> to vector<10x8xbf16>
    "tpu.trace_start"() <{level = 10 : i32, message = "qd,kd->qk"}> : () -> ()
    %cst_48 = arith.constant dense<0.000000e+00> : vector<10x10xf32>
    %150 = tpu.matmul %148, %149, %cst_48 {dimension_numbers = #tpu.dot_dimension_numbers<[1], [1], [0], [0], [0, 0, 1, 0], [], []>} : vector<10x8xbf16>, vector<10x8xbf16>, vector<10x10xf32> -> vector<10x10xf32>
    "tpu.trace_stop"() : () -> ()
    %151 = arith.addf %150, %38 : vector<10x10xf32>
    %cst_49 = arith.constant dense<0xFF800000> : vector<10xf32>
    %152 = vector.multi_reduction <maximumf>, %151, %cst_49 [1] : vector<10x10xf32> to vector<10xf32>
    %153 = vector.shape_cast %152 : vector<10xf32> to vector<10x1xf32>
    %154 = vector.broadcast %153 : vector<10x1xf32> to vector<10x10xf32>
    %155 = arith.subf %151, %154 : vector<10x10xf32>
    %156 = math.exp %155 : vector<10x10xf32>
    %cst_50 = arith.constant dense<0.000000e+00> : vector<10xf32>
    %157 = vector.multi_reduction <add>, %156, %cst_50 [1] : vector<10x10xf32> to vector<10xf32>
    %158 = vector.shape_cast %157 : vector<10xf32> to vector<10x1xf32>
    %159 = tpu.reciprocal %158 {approx = true} : vector<10x1xf32> -> vector<10x1xf32>
    %160 = vector.broadcast %159 : vector<10x1xf32> to vector<10x10xf32>
    %161 = arith.mulf %156, %160 : vector<10x10xf32>
    %162 = arith.truncf %161 : vector<10x10xf32> to vector<10x10xbf16>
    %163 = arith.truncf %147 : vector<10x8xf32> to vector<10x8xbf16>
    %cst_51 = arith.constant dense<0.000000e+00> : vector<10x8xf32>
    %164 = tpu.matmul %162, %163, %cst_51 {dimension_numbers = #tpu.dot_dimension_numbers<[1], [0], [0], [1], [0, 0, 1, 1], [], []>} : vector<10x10xbf16>, vector<10x8xbf16>, vector<10x8xf32> -> vector<10x8xf32>
    %165 = tpu.concatenate %98, %120, %142, %164 in 1 : vector<10x8xf32>, vector<10x8xf32>, vector<10x8xf32>, vector<10x8xf32> -> vector<10x32xf32>
    %166 = arith.truncf %165 : vector<10x32xf32> to vector<10x32xbf16>
    %167 = arith.index_cast %c0_i32 : i32 to index
    %c0_52 = arith.constant 0 : index
    %c0_53 = arith.constant 0 : index
    %168 = vector.load %arg11[%167, %c0_52, %c0_53] : memref<2x32x32xbf16, #tpu.memory_space<vmem>>, vector<1x32x32xbf16>
    %169 = vector.shape_cast %168 : vector<1x32x32xbf16> to vector<32x32xbf16>
    %cst_54 = arith.constant dense<0.000000e+00> : vector<10x32xf32>
    %170 = tpu.matmul %166, %169, %cst_54 {dimension_numbers = #tpu.dot_dimension_numbers<[1], [0], [0], [1], [0, 0, 1, 1], [], []>} : vector<10x32xbf16>, vector<32x32xbf16>, vector<10x32xf32> -> vector<10x32xf32>
    %171 = arith.index_cast %c0_i32 : i32 to index
    %c0_55 = arith.constant 0 : index
    %c0_56 = arith.constant 0 : index
    %172 = vector.load %arg12[%171, %c0_55, %c0_56] : memref<2x1x32xf32, #tpu.memory_space<vmem>>, vector<1x1x32xf32>
    %173 = vector.shape_cast %172 : vector<1x1x32xf32> to vector<1x32xf32>
    %174 = vector.broadcast %173 : vector<1x32xf32> to vector<10x32xf32>
    %175 = arith.addf %170, %174 : vector<10x32xf32>
    %176 = arith.addf %37, %175 : vector<10x32xf32>
    %177 = arith.index_cast %c0_i32 : i32 to index
    %c0_57 = arith.constant 0 : index
    %c0_58 = arith.constant 0 : index
    %178 = vector.load %arg13[%177, %c0_57, %c0_58] : memref<2x1x32xf32, #tpu.memory_space<vmem>>, vector<1x1x32xf32>
    %179 = vector.shape_cast %178 : vector<1x1x32xf32> to vector<1x32xf32>
    %180 = arith.index_cast %c0_i32 : i32 to index
    %c0_59 = arith.constant 0 : index
    %c0_60 = arith.constant 0 : index
    %181 = vector.load %arg14[%180, %c0_59, %c0_60] : memref<2x1x32xf32, #tpu.memory_space<vmem>>, vector<1x1x32xf32>
    %182 = vector.shape_cast %181 : vector<1x1x32xf32> to vector<1x32xf32>
    %cst_61 = arith.constant dense<0.000000e+00> : vector<10xf32>
    %183 = vector.multi_reduction <add>, %176, %cst_61 [1] : vector<10x32xf32> to vector<10xf32>
    %184 = vector.shape_cast %183 : vector<10xf32> to vector<10x1xf32>
    %cst_62 = arith.constant 3.200000e+01 : f32
    %185 = vector.broadcast %cst_62 : f32 to vector<10x1xf32>
    %186 = arith.divf %184, %185 : vector<10x1xf32>
    %187 = vector.broadcast %186 : vector<10x1xf32> to vector<10x32xf32>
    %188 = arith.subf %176, %187 : vector<10x32xf32>
    %189 = arith.mulf %188, %188 : vector<10x32xf32>
    %cst_63 = arith.constant dense<0.000000e+00> : vector<10xf32>
    %190 = vector.multi_reduction <add>, %189, %cst_63 [1] : vector<10x32xf32> to vector<10xf32>
    %191 = vector.shape_cast %190 : vector<10xf32> to vector<10x1xf32>
    %cst_64 = arith.constant 3.200000e+01 : f32
    %192 = vector.broadcast %cst_64 : f32 to vector<10x1xf32>
    %193 = arith.divf %191, %192 : vector<10x1xf32>
    %194 = vector.broadcast %186 : vector<10x1xf32> to vector<10x32xf32>
    %195 = arith.subf %176, %194 : vector<10x32xf32>
    %cst_65 = arith.constant 9.99999974E-6 : f32
    %196 = vector.broadcast %cst_65 : f32 to vector<10x1xf32>
    %197 = arith.addf %193, %196 : vector<10x1xf32>
    %198 = math.rsqrt %197 : vector<10x1xf32>
    %199 = vector.broadcast %198 : vector<10x1xf32> to vector<10x32xf32>
    %200 = arith.mulf %195, %199 : vector<10x32xf32>
    %201 = vector.broadcast %179 : vector<1x32xf32> to vector<10x32xf32>
    %202 = arith.mulf %200, %201 : vector<10x32xf32>
    %203 = vector.broadcast %182 : vector<1x32xf32> to vector<10x32xf32>
    %204 = arith.addf %202, %203 : vector<10x32xf32>
    %205 = arith.truncf %204 : vector<10x32xf32> to vector<10x32xbf16>
    %206 = arith.index_cast %c0_i32 : i32 to index
    %c0_66 = arith.constant 0 : index
    %c0_67 = arith.constant 0 : index
    %207 = vector.load %arg15[%206, %c0_66, %c0_67] : memref<2x32x128xbf16, #tpu.memory_space<vmem>>, vector<1x32x128xbf16>
    %208 = vector.shape_cast %207 : vector<1x32x128xbf16> to vector<32x128xbf16>
    %cst_68 = arith.constant dense<0.000000e+00> : vector<10x128xf32>
    %209 = tpu.matmul %205, %208, %cst_68 {dimension_numbers = #tpu.dot_dimension_numbers<[1], [0], [0], [1], [0, 0, 1, 1], [], []>} : vector<10x32xbf16>, vector<32x128xbf16>, vector<10x128xf32> -> vector<10x128xf32>
    %210 = arith.index_cast %c0_i32 : i32 to index
    %c0_69 = arith.constant 0 : index
    %c0_70 = arith.constant 0 : index
    %211 = vector.load %arg16[%210, %c0_69, %c0_70] : memref<2x1x128xf32, #tpu.memory_space<vmem>>, vector<1x1x128xf32>
    %212 = vector.shape_cast %211 : vector<1x1x128xf32> to vector<1x128xf32>
    %213 = vector.broadcast %212 : vector<1x128xf32> to vector<10x128xf32>
    %214 = arith.addf %209, %213 : vector<10x128xf32>
    %cst_71 = arith.constant 1.702000e+00 : f32
    %215 = vector.broadcast %cst_71 : f32 to vector<10x128xf32>
    %216 = arith.mulf %215, %214 : vector<10x128xf32>
    %217 = arith.negf %216 : vector<10x128xf32>
    %218 = math.exp %217 : vector<10x128xf32>
    %cst_72 = arith.constant 1.000000e+00 : f32
    %219 = vector.broadcast %cst_72 : f32 to vector<10x128xf32>
    %220 = arith.addf %219, %218 : vector<10x128xf32>
    %221 = arith.divf %219, %220 : vector<10x128xf32>
    %222 = arith.mulf %214, %221 : vector<10x128xf32>
    %223 = arith.truncf %222 : vector<10x128xf32> to vector<10x128xbf16>
    %224 = arith.index_cast %c0_i32 : i32 to index
    %c0_73 = arith.constant 0 : index
    %c0_74 = arith.constant 0 : index
    %225 = vector.load %arg17[%224, %c0_73, %c0_74] : memref<2x128x32xbf16, #tpu.memory_space<vmem>>, vector<1x128x32xbf16>
    %226 = vector.shape_cast %225 : vector<1x128x32xbf16> to vector<128x32xbf16>
    %cst_75 = arith.constant dense<0.000000e+00> : vector<10x32xf32>
    %227 = tpu.matmul %223, %226, %cst_75 {dimension_numbers = #tpu.dot_dimension_numbers<[1], [0], [0], [1], [0, 0, 1, 1], [], []>} : vector<10x128xbf16>, vector<128x32xbf16>, vector<10x32xf32> -> vector<10x32xf32>
    %228 = arith.index_cast %c0_i32 : i32 to index
    %c0_76 = arith.constant 0 : index
    %c0_77 = arith.constant 0 : index
    %229 = vector.load %arg18[%228, %c0_76, %c0_77] : memref<2x1x32xf32, #tpu.memory_space<vmem>>, vector<1x1x32xf32>
    %230 = vector.shape_cast %229 : vector<1x1x32xf32> to vector<1x32xf32>
    %231 = vector.broadcast %230 : vector<1x32xf32> to vector<10x32xf32>
    %232 = arith.addf %227, %231 : vector<10x32xf32>
    %233 = arith.addf %176, %232 : vector<10x32xf32>
    %c1_i32 = arith.constant 1 : i32
    %234 = arith.index_cast %c1_i32 : i32 to index
    %c0_78 = arith.constant 0 : index
    %c0_79 = arith.constant 0 : index
    %235 = vector.load %arg7[%234, %c0_78, %c0_79] : memref<2x1x32xf32, #tpu.memory_space<vmem>>, vector<1x1x32xf32>
    %236 = vector.shape_cast %235 : vector<1x1x32xf32> to vector<1x32xf32>
    %237 = arith.index_cast %c1_i32 : i32 to index
    %c0_80 = arith.constant 0 : index
    %c0_81 = arith.constant 0 : index
    %238 = vector.load %arg8[%237, %c0_80, %c0_81] : memref<2x1x32xf32, #tpu.memory_space<vmem>>, vector<1x1x32xf32>
    %239 = vector.shape_cast %238 : vector<1x1x32xf32> to vector<1x32xf32>
    %cst_82 = arith.constant dense<0.000000e+00> : vector<10xf32>
    %240 = vector.multi_reduction <add>, %233, %cst_82 [1] : vector<10x32xf32> to vector<10xf32>
    %241 = vector.shape_cast %240 : vector<10xf32> to vector<10x1xf32>
    %cst_83 = arith.constant 3.200000e+01 : f32
    %242 = vector.broadcast %cst_83 : f32 to vector<10x1xf32>
    %243 = arith.divf %241, %242 : vector<10x1xf32>
    %244 = vector.broadcast %243 : vector<10x1xf32> to vector<10x32xf32>
    %245 = arith.subf %233, %244 : vector<10x32xf32>
    %246 = arith.mulf %245, %245 : vector<10x32xf32>
    %cst_84 = arith.constant dense<0.000000e+00> : vector<10xf32>
    %247 = vector.multi_reduction <add>, %246, %cst_84 [1] : vector<10x32xf32> to vector<10xf32>
    %248 = vector.shape_cast %247 : vector<10xf32> to vector<10x1xf32>
    %cst_85 = arith.constant 3.200000e+01 : f32
    %249 = vector.broadcast %cst_85 : f32 to vector<10x1xf32>
    %250 = arith.divf %248, %249 : vector<10x1xf32>
    %251 = vector.broadcast %243 : vector<10x1xf32> to vector<10x32xf32>
    %252 = arith.subf %233, %251 : vector<10x32xf32>
    %cst_86 = arith.constant 9.99999974E-6 : f32
    %253 = vector.broadcast %cst_86 : f32 to vector<10x1xf32>
    %254 = arith.addf %250, %253 : vector<10x1xf32>
    %255 = math.rsqrt %254 : vector<10x1xf32>
    %256 = vector.broadcast %255 : vector<10x1xf32> to vector<10x32xf32>
    %257 = arith.mulf %252, %256 : vector<10x32xf32>
    %258 = vector.broadcast %236 : vector<1x32xf32> to vector<10x32xf32>
    %259 = arith.mulf %257, %258 : vector<10x32xf32>
    %260 = vector.broadcast %239 : vector<1x32xf32> to vector<10x32xf32>
    %261 = arith.addf %259, %260 : vector<10x32xf32>
    %262 = arith.truncf %261 : vector<10x32xf32> to vector<10x32xbf16>
    %263 = arith.index_cast %c1_i32 : i32 to index
    %c0_87 = arith.constant 0 : index
    %c0_88 = arith.constant 0 : index
    %264 = vector.load %arg9[%263, %c0_87, %c0_88] : memref<2x32x96xbf16, #tpu.memory_space<vmem>>, vector<1x32x96xbf16>
    %265 = vector.shape_cast %264 : vector<1x32x96xbf16> to vector<32x96xbf16>
    %cst_89 = arith.constant dense<0.000000e+00> : vector<10x96xf32>
    %266 = tpu.matmul %262, %265, %cst_89 {dimension_numbers = #tpu.dot_dimension_numbers<[1], [0], [0], [1], [0, 0, 1, 1], [], []>} : vector<10x32xbf16>, vector<32x96xbf16>, vector<10x96xf32> -> vector<10x96xf32>
    %267 = arith.index_cast %c1_i32 : i32 to index
    %c0_90 = arith.constant 0 : index
    %c0_91 = arith.constant 0 : index
    %268 = vector.load %arg10[%267, %c0_90, %c0_91] : memref<2x1x96xf32, #tpu.memory_space<vmem>>, vector<1x1x96xf32>
    %269 = vector.shape_cast %268 : vector<1x1x96xf32> to vector<1x96xf32>
    %270 = vector.broadcast %269 : vector<1x96xf32> to vector<10x96xf32>
    %271 = arith.addf %266, %270 : vector<10x96xf32>
    %272 = vector.extract_strided_slice %271 {offsets = [0, 0], sizes = [10, 8], strides = [1, 1]} : vector<10x96xf32> to vector<10x8xf32>
    %cst_92 = arith.constant 0.353553385 : f32
    %273 = vector.broadcast %cst_92 : f32 to vector<10x8xf32>
    %274 = arith.mulf %272, %273 : vector<10x8xf32>
    %275 = vector.extract_strided_slice %271 {offsets = [0, 32], sizes = [10, 8], strides = [1, 1]} : vector<10x96xf32> to vector<10x8xf32>
    %276 = vector.extract_strided_slice %271 {offsets = [0, 64], sizes = [10, 8], strides = [1, 1]} : vector<10x96xf32> to vector<10x8xf32>
    %277 = arith.truncf %274 : vector<10x8xf32> to vector<10x8xbf16>
    %278 = arith.truncf %275 : vector<10x8xf32> to vector<10x8xbf16>
    "tpu.trace_start"() <{level = 10 : i32, message = "qd,kd->qk"}> : () -> ()
    %cst_93 = arith.constant dense<0.000000e+00> : vector<10x10xf32>
    %279 = tpu.matmul %277, %278, %cst_93 {dimension_numbers = #tpu.dot_dimension_numbers<[1], [1], [0], [0], [0, 0, 1, 0], [], []>} : vector<10x8xbf16>, vector<10x8xbf16>, vector<10x10xf32> -> vector<10x10xf32>
    "tpu.trace_stop"() : () -> ()
    %280 = arith.addf %279, %38 : vector<10x10xf32>
    %cst_94 = arith.constant dense<0xFF800000> : vector<10xf32>
    %281 = vector.multi_reduction <maximumf>, %280, %cst_94 [1] : vector<10x10xf32> to vector<10xf32>
    %282 = vector.shape_cast %281 : vector<10xf32> to vector<10x1xf32>
    %283 = vector.broadcast %282 : vector<10x1xf32> to vector<10x10xf32>
    %284 = arith.subf %280, %283 : vector<10x10xf32>
    %285 = math.exp %284 : vector<10x10xf32>
    %cst_95 = arith.constant dense<0.000000e+00> : vector<10xf32>
    %286 = vector.multi_reduction <add>, %285, %cst_95 [1] : vector<10x10xf32> to vector<10xf32>
    %287 = vector.shape_cast %286 : vector<10xf32> to vector<10x1xf32>
    %288 = tpu.reciprocal %287 {approx = true} : vector<10x1xf32> -> vector<10x1xf32>
    %289 = vector.broadcast %288 : vector<10x1xf32> to vector<10x10xf32>
    %290 = arith.mulf %285, %289 : vector<10x10xf32>
    %291 = arith.truncf %290 : vector<10x10xf32> to vector<10x10xbf16>
    %292 = arith.truncf %276 : vector<10x8xf32> to vector<10x8xbf16>
    %cst_96 = arith.constant dense<0.000000e+00> : vector<10x8xf32>
    %293 = tpu.matmul %291, %292, %cst_96 {dimension_numbers = #tpu.dot_dimension_numbers<[1], [0], [0], [1], [0, 0, 1, 1], [], []>} : vector<10x10xbf16>, vector<10x8xbf16>, vector<10x8xf32> -> vector<10x8xf32>
    %294 = vector.extract_strided_slice %271 {offsets = [0, 8], sizes = [10, 8], strides = [1, 1]} : vector<10x96xf32> to vector<10x8xf32>
    %cst_97 = arith.constant 0.353553385 : f32
    %295 = vector.broadcast %cst_97 : f32 to vector<10x8xf32>
    %296 = arith.mulf %294, %295 : vector<10x8xf32>
    %297 = vector.extract_strided_slice %271 {offsets = [0, 40], sizes = [10, 8], strides = [1, 1]} : vector<10x96xf32> to vector<10x8xf32>
    %298 = vector.extract_strided_slice %271 {offsets = [0, 72], sizes = [10, 8], strides = [1, 1]} : vector<10x96xf32> to vector<10x8xf32>
    %299 = arith.truncf %296 : vector<10x8xf32> to vector<10x8xbf16>
    %300 = arith.truncf %297 : vector<10x8xf32> to vector<10x8xbf16>
    "tpu.trace_start"() <{level = 10 : i32, message = "qd,kd->qk"}> : () -> ()
    %cst_98 = arith.constant dense<0.000000e+00> : vector<10x10xf32>
    %301 = tpu.matmul %299, %300, %cst_98 {dimension_numbers = #tpu.dot_dimension_numbers<[1], [1], [0], [0], [0, 0, 1, 0], [], []>} : vector<10x8xbf16>, vector<10x8xbf16>, vector<10x10xf32> -> vector<10x10xf32>
    "tpu.trace_stop"() : () -> ()
    %302 = arith.addf %301, %38 : vector<10x10xf32>
    %cst_99 = arith.constant dense<0xFF800000> : vector<10xf32>
    %303 = vector.multi_reduction <maximumf>, %302, %cst_99 [1] : vector<10x10xf32> to vector<10xf32>
    %304 = vector.shape_cast %303 : vector<10xf32> to vector<10x1xf32>
    %305 = vector.broadcast %304 : vector<10x1xf32> to vector<10x10xf32>
    %306 = arith.subf %302, %305 : vector<10x10xf32>
    %307 = math.exp %306 : vector<10x10xf32>
    %cst_100 = arith.constant dense<0.000000e+00> : vector<10xf32>
    %308 = vector.multi_reduction <add>, %307, %cst_100 [1] : vector<10x10xf32> to vector<10xf32>
    %309 = vector.shape_cast %308 : vector<10xf32> to vector<10x1xf32>
    %310 = tpu.reciprocal %309 {approx = true} : vector<10x1xf32> -> vector<10x1xf32>
    %311 = vector.broadcast %310 : vector<10x1xf32> to vector<10x10xf32>
    %312 = arith.mulf %307, %311 : vector<10x10xf32>
    %313 = arith.truncf %312 : vector<10x10xf32> to vector<10x10xbf16>
    %314 = arith.truncf %298 : vector<10x8xf32> to vector<10x8xbf16>
    %cst_101 = arith.constant dense<0.000000e+00> : vector<10x8xf32>
    %315 = tpu.matmul %313, %314, %cst_101 {dimension_numbers = #tpu.dot_dimension_numbers<[1], [0], [0], [1], [0, 0, 1, 1], [], []>} : vector<10x10xbf16>, vector<10x8xbf16>, vector<10x8xf32> -> vector<10x8xf32>
    %316 = vector.extract_strided_slice %271 {offsets = [0, 16], sizes = [10, 8], strides = [1, 1]} : vector<10x96xf32> to vector<10x8xf32>
    %cst_102 = arith.constant 0.353553385 : f32
    %317 = vector.broadcast %cst_102 : f32 to vector<10x8xf32>
    %318 = arith.mulf %316, %317 : vector<10x8xf32>
    %319 = vector.extract_strided_slice %271 {offsets = [0, 48], sizes = [10, 8], strides = [1, 1]} : vector<10x96xf32> to vector<10x8xf32>
    %320 = vector.extract_strided_slice %271 {offsets = [0, 80], sizes = [10, 8], strides = [1, 1]} : vector<10x96xf32> to vector<10x8xf32>
    %321 = arith.truncf %318 : vector<10x8xf32> to vector<10x8xbf16>
    %322 = arith.truncf %319 : vector<10x8xf32> to vector<10x8xbf16>
    "tpu.trace_start"() <{level = 10 : i32, message = "qd,kd->qk"}> : () -> ()
    %cst_103 = arith.constant dense<0.000000e+00> : vector<10x10xf32>
    %323 = tpu.matmul %321, %322, %cst_103 {dimension_numbers = #tpu.dot_dimension_numbers<[1], [1], [0], [0], [0, 0, 1, 0], [], []>} : vector<10x8xbf16>, vector<10x8xbf16>, vector<10x10xf32> -> vector<10x10xf32>
    "tpu.trace_stop"() : () -> ()
    %324 = arith.addf %323, %38 : vector<10x10xf32>
    %cst_104 = arith.constant dense<0xFF800000> : vector<10xf32>
    %325 = vector.multi_reduction <maximumf>, %324, %cst_104 [1] : vector<10x10xf32> to vector<10xf32>
    %326 = vector.shape_cast %325 : vector<10xf32> to vector<10x1xf32>
    %327 = vector.broadcast %326 : vector<10x1xf32> to vector<10x10xf32>
    %328 = arith.subf %324, %327 : vector<10x10xf32>
    %329 = math.exp %328 : vector<10x10xf32>
    %cst_105 = arith.constant dense<0.000000e+00> : vector<10xf32>
    %330 = vector.multi_reduction <add>, %329, %cst_105 [1] : vector<10x10xf32> to vector<10xf32>
    %331 = vector.shape_cast %330 : vector<10xf32> to vector<10x1xf32>
    %332 = tpu.reciprocal %331 {approx = true} : vector<10x1xf32> -> vector<10x1xf32>
    %333 = vector.broadcast %332 : vector<10x1xf32> to vector<10x10xf32>
    %334 = arith.mulf %329, %333 : vector<10x10xf32>
    %335 = arith.truncf %334 : vector<10x10xf32> to vector<10x10xbf16>
    %336 = arith.truncf %320 : vector<10x8xf32> to vector<10x8xbf16>
    %cst_106 = arith.constant dense<0.000000e+00> : vector<10x8xf32>
    %337 = tpu.matmul %335, %336, %cst_106 {dimension_numbers = #tpu.dot_dimension_numbers<[1], [0], [0], [1], [0, 0, 1, 1], [], []>} : vector<10x10xbf16>, vector<10x8xbf16>, vector<10x8xf32> -> vector<10x8xf32>
    %338 = vector.extract_strided_slice %271 {offsets = [0, 24], sizes = [10, 8], strides = [1, 1]} : vector<10x96xf32> to vector<10x8xf32>
    %cst_107 = arith.constant 0.353553385 : f32
    %339 = vector.broadcast %cst_107 : f32 to vector<10x8xf32>
    %340 = arith.mulf %338, %339 : vector<10x8xf32>
    %341 = vector.extract_strided_slice %271 {offsets = [0, 56], sizes = [10, 8], strides = [1, 1]} : vector<10x96xf32> to vector<10x8xf32>
    %342 = vector.extract_strided_slice %271 {offsets = [0, 88], sizes = [10, 8], strides = [1, 1]} : vector<10x96xf32> to vector<10x8xf32>
    %343 = arith.truncf %340 : vector<10x8xf32> to vector<10x8xbf16>
    %344 = arith.truncf %341 : vector<10x8xf32> to vector<10x8xbf16>
    "tpu.trace_start"() <{level = 10 : i32, message = "qd,kd->qk"}> : () -> ()
    %cst_108 = arith.constant dense<0.000000e+00> : vector<10x10xf32>
    %345 = tpu.matmul %343, %344, %cst_108 {dimension_numbers = #tpu.dot_dimension_numbers<[1], [1], [0], [0], [0, 0, 1, 0], [], []>} : vector<10x8xbf16>, vector<10x8xbf16>, vector<10x10xf32> -> vector<10x10xf32>
    "tpu.trace_stop"() : () -> ()
    %346 = arith.addf %345, %38 : vector<10x10xf32>
    %cst_109 = arith.constant dense<0xFF800000> : vector<10xf32>
    %347 = vector.multi_reduction <maximumf>, %346, %cst_109 [1] : vector<10x10xf32> to vector<10xf32>
    %348 = vector.shape_cast %347 : vector<10xf32> to vector<10x1xf32>
    %349 = vector.broadcast %348 : vector<10x1xf32> to vector<10x10xf32>
    %350 = arith.subf %346, %349 : vector<10x10xf32>
    %351 = math.exp %350 : vector<10x10xf32>
    %cst_110 = arith.constant dense<0.000000e+00> : vector<10xf32>
    %352 = vector.multi_reduction <add>, %351, %cst_110 [1] : vector<10x10xf32> to vector<10xf32>
    %353 = vector.shape_cast %352 : vector<10xf32> to vector<10x1xf32>
    %354 = tpu.reciprocal %353 {approx = true} : vector<10x1xf32> -> vector<10x1xf32>
    %355 = vector.broadcast %354 : vector<10x1xf32> to vector<10x10xf32>
    %356 = arith.mulf %351, %355 : vector<10x10xf32>
    %357 = arith.truncf %356 : vector<10x10xf32> to vector<10x10xbf16>
    %358 = arith.truncf %342 : vector<10x8xf32> to vector<10x8xbf16>
    %cst_111 = arith.constant dense<0.000000e+00> : vector<10x8xf32>
    %359 = tpu.matmul %357, %358, %cst_111 {dimension_numbers = #tpu.dot_dimension_numbers<[1], [0], [0], [1], [0, 0, 1, 1], [], []>} : vector<10x10xbf16>, vector<10x8xbf16>, vector<10x8xf32> -> vector<10x8xf32>
    %360 = tpu.concatenate %293, %315, %337, %359 in 1 : vector<10x8xf32>, vector<10x8xf32>, vector<10x8xf32>, vector<10x8xf32> -> vector<10x32xf32>
    %361 = arith.truncf %360 : vector<10x32xf32> to vector<10x32xbf16>
    %362 = arith.index_cast %c1_i32 : i32 to index
    %c0_112 = arith.constant 0 : index
    %c0_113 = arith.constant 0 : index
    %363 = vector.load %arg11[%362, %c0_112, %c0_113] : memref<2x32x32xbf16, #tpu.memory_space<vmem>>, vector<1x32x32xbf16>
    %364 = vector.shape_cast %363 : vector<1x32x32xbf16> to vector<32x32xbf16>
    %cst_114 = arith.constant dense<0.000000e+00> : vector<10x32xf32>
    %365 = tpu.matmul %361, %364, %cst_114 {dimension_numbers = #tpu.dot_dimension_numbers<[1], [0], [0], [1], [0, 0, 1, 1], [], []>} : vector<10x32xbf16>, vector<32x32xbf16>, vector<10x32xf32> -> vector<10x32xf32>
    %366 = arith.index_cast %c1_i32 : i32 to index
    %c0_115 = arith.constant 0 : index
    %c0_116 = arith.constant 0 : index
    %367 = vector.load %arg12[%366, %c0_115, %c0_116] : memref<2x1x32xf32, #tpu.memory_space<vmem>>, vector<1x1x32xf32>
    %368 = vector.shape_cast %367 : vector<1x1x32xf32> to vector<1x32xf32>
    %369 = vector.broadcast %368 : vector<1x32xf32> to vector<10x32xf32>
    %370 = arith.addf %365, %369 : vector<10x32xf32>
    %371 = arith.addf %233, %370 : vector<10x32xf32>
    %372 = arith.index_cast %c1_i32 : i32 to index
    %c0_117 = arith.constant 0 : index
    %c0_118 = arith.constant 0 : index
    %373 = vector.load %arg13[%372, %c0_117, %c0_118] : memref<2x1x32xf32, #tpu.memory_space<vmem>>, vector<1x1x32xf32>
    %374 = vector.shape_cast %373 : vector<1x1x32xf32> to vector<1x32xf32>
    %375 = arith.index_cast %c1_i32 : i32 to index
    %c0_119 = arith.constant 0 : index
    %c0_120 = arith.constant 0 : index
    %376 = vector.load %arg14[%375, %c0_119, %c0_120] : memref<2x1x32xf32, #tpu.memory_space<vmem>>, vector<1x1x32xf32>
    %377 = vector.shape_cast %376 : vector<1x1x32xf32> to vector<1x32xf32>
    %cst_121 = arith.constant dense<0.000000e+00> : vector<10xf32>
    %378 = vector.multi_reduction <add>, %371, %cst_121 [1] : vector<10x32xf32> to vector<10xf32>
    %379 = vector.shape_cast %378 : vector<10xf32> to vector<10x1xf32>
    %cst_122 = arith.constant 3.200000e+01 : f32
    %380 = vector.broadcast %cst_122 : f32 to vector<10x1xf32>
    %381 = arith.divf %379, %380 : vector<10x1xf32>
    %382 = vector.broadcast %381 : vector<10x1xf32> to vector<10x32xf32>
    %383 = arith.subf %371, %382 : vector<10x32xf32>
    %384 = arith.mulf %383, %383 : vector<10x32xf32>
    %cst_123 = arith.constant dense<0.000000e+00> : vector<10xf32>
    %385 = vector.multi_reduction <add>, %384, %cst_123 [1] : vector<10x32xf32> to vector<10xf32>
    %386 = vector.shape_cast %385 : vector<10xf32> to vector<10x1xf32>
    %cst_124 = arith.constant 3.200000e+01 : f32
    %387 = vector.broadcast %cst_124 : f32 to vector<10x1xf32>
    %388 = arith.divf %386, %387 : vector<10x1xf32>
    %389 = vector.broadcast %381 : vector<10x1xf32> to vector<10x32xf32>
    %390 = arith.subf %371, %389 : vector<10x32xf32>
    %cst_125 = arith.constant 9.99999974E-6 : f32
    %391 = vector.broadcast %cst_125 : f32 to vector<10x1xf32>
    %392 = arith.addf %388, %391 : vector<10x1xf32>
    %393 = math.rsqrt %392 : vector<10x1xf32>
    %394 = vector.broadcast %393 : vector<10x1xf32> to vector<10x32xf32>
    %395 = arith.mulf %390, %394 : vector<10x32xf32>
    %396 = vector.broadcast %374 : vector<1x32xf32> to vector<10x32xf32>
    %397 = arith.mulf %395, %396 : vector<10x32xf32>
    %398 = vector.broadcast %377 : vector<1x32xf32> to vector<10x32xf32>
    %399 = arith.addf %397, %398 : vector<10x32xf32>
    %400 = arith.truncf %399 : vector<10x32xf32> to vector<10x32xbf16>
    %401 = arith.index_cast %c1_i32 : i32 to index
    %c0_126 = arith.constant 0 : index
    %c0_127 = arith.constant 0 : index
    %402 = vector.load %arg15[%401, %c0_126, %c0_127] : memref<2x32x128xbf16, #tpu.memory_space<vmem>>, vector<1x32x128xbf16>
    %403 = vector.shape_cast %402 : vector<1x32x128xbf16> to vector<32x128xbf16>
    %cst_128 = arith.constant dense<0.000000e+00> : vector<10x128xf32>
    %404 = tpu.matmul %400, %403, %cst_128 {dimension_numbers = #tpu.dot_dimension_numbers<[1], [0], [0], [1], [0, 0, 1, 1], [], []>} : vector<10x32xbf16>, vector<32x128xbf16>, vector<10x128xf32> -> vector<10x128xf32>
    %405 = arith.index_cast %c1_i32 : i32 to index
    %c0_129 = arith.constant 0 : index
    %c0_130 = arith.constant 0 : index
    %406 = vector.load %arg16[%405, %c0_129, %c0_130] : memref<2x1x128xf32, #tpu.memory_space<vmem>>, vector<1x1x128xf32>
    %407 = vector.shape_cast %406 : vector<1x1x128xf32> to vector<1x128xf32>
    %408 = vector.broadcast %407 : vector<1x128xf32> to vector<10x128xf32>
    %409 = arith.addf %404, %408 : vector<10x128xf32>
    %cst_131 = arith.constant 1.702000e+00 : f32
    %410 = vector.broadcast %cst_131 : f32 to vector<10x128xf32>
    %411 = arith.mulf %410, %409 : vector<10x128xf32>
    %412 = arith.negf %411 : vector<10x128xf32>
    %413 = math.exp %412 : vector<10x128xf32>
    %cst_132 = arith.constant 1.000000e+00 : f32
    %414 = vector.broadcast %cst_132 : f32 to vector<10x128xf32>
    %415 = arith.addf %414, %413 : vector<10x128xf32>
    %416 = arith.divf %414, %415 : vector<10x128xf32>
    %417 = arith.mulf %409, %416 : vector<10x128xf32>
    %418 = arith.truncf %417 : vector<10x128xf32> to vector<10x128xbf16>
    %419 = arith.index_cast %c1_i32 : i32 to index
    %c0_133 = arith.constant 0 : index
    %c0_134 = arith.constant 0 : index
    %420 = vector.load %arg17[%419, %c0_133, %c0_134] : memref<2x128x32xbf16, #tpu.memory_space<vmem>>, vector<1x128x32xbf16>
    %421 = vector.shape_cast %420 : vector<1x128x32xbf16> to vector<128x32xbf16>
    %cst_135 = arith.constant dense<0.000000e+00> : vector<10x32xf32>
    %422 = tpu.matmul %418, %421, %cst_135 {dimension_numbers = #tpu.dot_dimension_numbers<[1], [0], [0], [1], [0, 0, 1, 1], [], []>} : vector<10x128xbf16>, vector<128x32xbf16>, vector<10x32xf32> -> vector<10x32xf32>
    %423 = arith.index_cast %c1_i32 : i32 to index
    %c0_136 = arith.constant 0 : index
    %c0_137 = arith.constant 0 : index
    %424 = vector.load %arg18[%423, %c0_136, %c0_137] : memref<2x1x32xf32, #tpu.memory_space<vmem>>, vector<1x1x32xf32>
    %425 = vector.shape_cast %424 : vector<1x1x32xf32> to vector<1x32xf32>
    %426 = vector.broadcast %425 : vector<1x32xf32> to vector<10x32xf32>
    %427 = arith.addf %422, %426 : vector<10x32xf32>
    %428 = arith.addf %371, %427 : vector<10x32xf32>
    %c2_i32 = arith.constant 2 : i32
    %429 = vector.extract_strided_slice %428 {offsets = [0, 0], sizes = [1, 32], strides = [1, 1]} : vector<10x32xf32> to vector<1x32xf32>
    %430 = vector.extract_strided_slice %428 {offsets = [5, 0], sizes = [1, 32], strides = [1, 1]} : vector<10x32xf32> to vector<1x32xf32>
    %431 = tpu.concatenate %429, %430 in 0 : vector<1x32xf32>, vector<1x32xf32> -> vector<2x32xf32>
    %c0_138 = arith.constant 0 : index
    %c0_139 = arith.constant 0 : index
    %432 = vector.load %arg19[%c0_138, %c0_139] : memref<1x32xf32, #tpu.memory_space<vmem>>, vector<1x32xf32>
    %c0_140 = arith.constant 0 : index
    %c0_141 = arith.constant 0 : index
    %433 = vector.load %arg20[%c0_140, %c0_141] : memref<1x32xf32, #tpu.memory_space<vmem>>, vector<1x32xf32>
    %cst_142 = arith.constant dense<0.000000e+00> : vector<2xf32>
    %434 = vector.multi_reduction <add>, %431, %cst_142 [1] : vector<2x32xf32> to vector<2xf32>
    %435 = vector.shape_cast %434 : vector<2xf32> to vector<2x1xf32>
    %cst_143 = arith.constant 3.200000e+01 : f32
    %436 = vector.broadcast %cst_143 : f32 to vector<2x1xf32>
    %437 = arith.divf %435, %436 : vector<2x1xf32>
    %438 = vector.broadcast %437 : vector<2x1xf32> to vector<2x32xf32>
    %439 = arith.subf %431, %438 : vector<2x32xf32>
    %440 = arith.mulf %439, %439 : vector<2x32xf32>
    %cst_144 = arith.constant dense<0.000000e+00> : vector<2xf32>
    %441 = vector.multi_reduction <add>, %440, %cst_144 [1] : vector<2x32xf32> to vector<2xf32>
    %442 = vector.shape_cast %441 : vector<2xf32> to vector<2x1xf32>
    %cst_145 = arith.constant 3.200000e+01 : f32
    %443 = vector.broadcast %cst_145 : f32 to vector<2x1xf32>
    %444 = arith.divf %442, %443 : vector<2x1xf32>
    %445 = vector.broadcast %437 : vector<2x1xf32> to vector<2x32xf32>
    %446 = arith.subf %431, %445 : vector<2x32xf32>
    %cst_146 = arith.constant 9.99999974E-6 : f32
    %447 = vector.broadcast %cst_146 : f32 to vector<2x1xf32>
    %448 = arith.addf %444, %447 : vector<2x1xf32>
    %449 = math.rsqrt %448 : vector<2x1xf32>
    %450 = vector.broadcast %449 : vector<2x1xf32> to vector<2x32xf32>
    %451 = arith.mulf %446, %450 : vector<2x32xf32>
    %452 = vector.broadcast %432 : vector<1x32xf32> to vector<2x32xf32>
    %453 = arith.mulf %451, %452 : vector<2x32xf32>
    %454 = vector.broadcast %433 : vector<1x32xf32> to vector<2x32xf32>
    %455 = arith.addf %453, %454 : vector<2x32xf32>
    %456 = arith.truncf %455 : vector<2x32xf32> to vector<2x32xbf16>
    %c0_147 = arith.constant 0 : index
    %c0_148 = arith.constant 0 : index
    %457 = vector.load %arg21[%c0_147, %c0_148] : memref<32x128xbf16, #tpu.memory_space<vmem>>, vector<32x128xbf16>
    %cst_149 = arith.constant dense<0.000000e+00> : vector<2x128xf32>
    %458 = tpu.matmul %456, %457, %cst_149 {dimension_numbers = #tpu.dot_dimension_numbers<[1], [0], [0], [1], [0, 0, 1, 1], [], []>} : vector<2x32xbf16>, vector<32x128xbf16>, vector<2x128xf32> -> vector<2x128xf32>
    %c0_150 = arith.constant 0 : index
    %c0_151 = arith.constant 0 : index
    %459 = vector.load %arg22[%c0_150, %c0_151] : memref<2x128xf32, #tpu.memory_space<vmem>>, vector<2x128xf32>
    tpu.vector_store %arg22[%c0_150, %c0_151], %458 {strides = array<i32>} : memref<2x128xf32, #tpu.memory_space<vmem>>, vector<2x128xf32>,
    return
  }
}

</mosaic_0001>

<bundles_post_ra>
// kernel: _lambda_.1
= control target key start
LH: loop header
LB: loop body
LE: loop exit
PB: predicated region body
PF: predicated region fallthrough
CT: control target
= control target key end

     0   :  { %s3602_s0 = inlined_call_operand.vmem [shape: f32[8,192], index: 0, kind: input, shape index: {}]   ;;  %s3603_s1 = inlined_call_operand.vmem [shape: bf16[192,32], index: 1, kind: input, shape index: {}]   ;;  %s3604_s2 = inlined_call_operand.vmem [shape: f32[1,32], index: 2, kind: input, shape index: {}]   ;;  %s3605_s3 = inlined_call_operand.vmem [shape: f32[5,32], index: 3, kind: input, shape index: {}]   ;;  %s3606_s4 = inlined_call_operand.vmem [shape: f32[1,32], index: 4, kind: input, shape index: {}]   ;;  %s3607_s5 = inlined_call_operand.vmem [shape: f32[1,32], index: 5, kind: input, shape index: {}]   ;;  %s3608_s6 = inlined_call_operand.vmem [shape: f32[10,10], index: 6, kind: input, shape index: {}]   ;;  %s3609_s7 = inlined_call_operand.vmem [shape: f32[2,1,32], index: 7, kind: input, shape index: {}]   ;;  %s3610_s8 = inlined_call_operand.vmem [shape: f32[2,1,32], index: 8, kind: input, shape index: {}]   ;;  %s3611_s9 = inlined_call_operand.vmem [shape: bf16[2,32,96], index: 9, kind: input, shape index: {}]   ;;  %s3612_s10 = inlined_call_operand.vmem [shape: f32[2,1,96], index: 10, kind: input, shape index: {}]   ;;  %s3613_s11 = inlined_call_operand.vmem [shape: bf16[2,32,32], index: 11, kind: input, shape index: {}]   ;;  %s3614_s12 = inlined_call_operand.vmem [shape: f32[2,1,32], index: 12, kind: input, shape index: {}]   ;;  %s3615_s13 = inlined_call_operand.vmem [shape: f32[2,1,32], index: 13, kind: input, shape index: {}]   ;;  %s3616_s14 = inlined_call_operand.vmem [shape: f32[2,1,32], index: 14, kind: input, shape index: {}]   ;;  %s3617_s15 = inlined_call_operand.vmem [shape: bf16[2,32,128], index: 15, kind: input, shape index: {}]   ;;  %s3618_s16 = inlined_call_operand.vmem [shape: f32[2,1,128], index: 16, kind: input, shape index: {}]   ;;  %s3619_s17 = inlined_call_operand.vmem [shape: bf16[2,128,32], index: 17, kind: input, shape index: {}]   ;;  %s3620_s18 = inlined_call_operand.vmem [shape: f32[2,1,32], index: 18, kind: input, shape index: {}]   ;;  %s3621_s19 = inlined_call_operand.vmem [shape: f32[1,32], index: 19, kind: input, shape index: {}]   ;;  %s3622_s20 = inlined_call_operand.vmem [shape: f32[1,32], index: 20, kind: input, shape index: {}]   ;;  %s3623_s21 = inlined_call_operand.vmem [shape: bf16[32,128], index: 21, kind: input, shape index: {}]   ;;  %s3624_s22 = inlined_call_operand.hbm [shape: f32[2,128], index: 22, kind: output, shape index: {}]  }
   0x1   :  { %3635 = sst [smem:[#allocation5_spill]] %s3602_s0 }
   0x2   :  { %3636 = sst [smem:[#allocation6_spill]] %s3603_s1 }
   0x3   :  { %3637 = sst [smem:[#allocation7_spill]] %s3604_s2 }
   0x4   :  { %3638 = sst [smem:[#allocation8_spill]] %s3605_s3 }
   0x5   :  { %3639 = sst [smem:[#allocation9_spill]] %s3606_s4 }
   0x6   :  { %3640 = sst [smem:[#allocation10_spill]] %s3607_s5 }
   0x7   :  { %3641 = sst [smem:[#allocation11_spill]] %s3608_s6 }
   0x8   :  { %s3642_s29 = sld [smem:[#allocation6_spill]]  ;;  %v2924_v1 = vmov 0   ;;  %vm173_vm0 = vcmask 523264  }
   0x9   :  { %177 = vmatprep.subr.bf16.mxu0 %v2924_v1  ;;  %s3643_s2 = sld [smem:[#allocation5_spill]] }
   0xe   :  { %v2756_v0 = vld [vmem:[%s3642_s29 + $0x38] sm:$0xff]   ;;  %v2757_v2 = vld [vmem:[%s3642_s29 + $0x30] sm:$0xff]   ;;  %v2758_v3 = vld [vmem:[%s3642_s29 + $0x28] sm:$0xff]  }
   0xf   :  { %178 = vmatpush1.bf16.msra.mxu0 %v2756_v0  ;;  %v2759_v4 = vld [vmem:[%s3642_s29 + $0x20] sm:$0xff]   ;;  %v2760_v5 = vld [vmem:[%s3642_s29 + $0x18] sm:$0xff]   ;;  %v74_v6 = vld [vmem:[%s3643_s2 + $0x8] sm:$0xff] }
  0x10   :  { %179 = vmatprep.subr.bf16.mxu0 %v2924_v1  ;;  %v76_v7 = vpack.c.bf16 %v74_v6, %v74_v6  ;;  %v2761_v8 = vld [vmem:[%s3642_s29 + $0x10] sm:$0xff]   ;;  %v2762_v9 = vld [vmem:[%s3642_s29 + $0x8] sm:$0xff]   ;;  %v2763_v10 = vld [vmem:[%s3642_s29] sm:$0xff]  }
  0x11   :  { %v2764_v11 = vld [vmem:[%s3642_s29 + $0x58] sm:$0xff]  }
  0x12   :  { %2331 = vmatprep.mubr.msk.bf16.mxu0 %vm173_vm0, %v76_v7 }
  0x13   :  { %180 = vmatpush1.bf16.msra.mxu0 %v2757_v2 }
  0x14   :  { %181 = vmatprep.subr.bf16.mxu0 %v2924_v1 }
  0x17   :  { %182 = vmatpush1.bf16.msra.mxu0 %v2758_v3 }
  0x18   :  { %183 = vmatprep.subr.bf16.mxu0 %v2924_v1 }
  0x1b   :  { %184 = vmatpush1.bf16.msra.mxu0 %v2759_v4 }
  0x1c   :  { %185 = vmatprep.subr.bf16.mxu0 %v2924_v1 }
  0x1f   :  { %186 = vmatpush1.bf16.msra.mxu0 %v2760_v5 }
  0x20   :  { %187 = vmatprep.subr.bf16.mxu0 %v2924_v1 }
  0x23   :  { %188 = vmatpush1.bf16.msra.mxu0 %v2761_v8 }
  0x24   :  { %189 = vmatprep.subr.bf16.mxu0 %v2924_v1 }
  0x27   :  { %190 = vmatpush1.bf16.msra.mxu0 %v2762_v9 }
  0x28   :  { %191 = vmatprep.subr.bf16.mxu0 %v2924_v1 }
  0x2b   :  { %192 = vmatpush1.bf16.msra.mxu0 %v2763_v10 }
  0x2c   :  { %201 = vmatprep.subr.bf16.mxu0 %v2924_v1 }
  0x2d   :  { %27 = vsyncpa [#allocation3], 0  ;;  %v2765_v12 = vld [vmem:[%s3642_s29 + $0x50] sm:$0xff]   ;;  %v2766_v13 = vld [vmem:[%s3642_s29 + $0x48] sm:$0xff]   ;;  %v231_v17 = vlaneseq  ;;  %s3644_s0 = sld [smem:[#allocation8_spill]]  ;;  %vm239_vm1 = vcmask 1040384  }
  0x2e   :  { %v2767_v14 = vld [vmem:[%s3642_s29 + $0x40] sm:$0xff]   ;;  %s3645_s5 = sld [smem:[#allocation7_spill]]  ;;  %vm241_vm2 = vcmask 1044480   ;;  %vm243_vm3 = vcmask 1045504   ;;  %vm247_vm4 = vcmask 261120   ;;  %vm251_vm5 = vcmask 254976  }
  0x2f   :  { %202 = vmatpush2.bf16.msra.mxu0 %v2764_v11  ;;  %v73_v15 = vld [vmem:[%s3643_s2] sm:$0xff]  ;;  %v232_v19 = vshrl.u32 %v231_v17, 7  ;;  %s3646_s24 = sld [smem:[#allocation9_spill]]  ;;  %vm2926_vm6 = vmmov 0   ;;  %s2927_s2 = smov 96   ;;  %vm413_vm7 = vcmask 64512  }
  0x30   :  { %203 = vmatprep.subr.bf16.mxu0 %v2924_v1  ;;  %v75_v16 = vpack.c.bf16 %v73_v15, %v73_v15  ;;  %s3647_s26 = sld [smem:[#allocation10_spill]]  ;;  %v2769_v15 = vld [vmem:[%s3611_s9] sm:$0xff]   ;;  %s2929_s6 = smov 120   ;;  %vm461_vm8 = vcmask 80896   ;;  %vm465_vm9 = vcmask 74752   ;;  %vm931_vm10 = vcmask 130048  }
  0x31   :  { %v233_v24 = vsub.s32 0, %v232_v19  ;;  %s3648_s27 = sld [smem:[#allocation11_spill]]  ;;  %s2930_s30 = smov 64   ;;  %vm934_vm11 = vcmask 195584  }
  0x32   :  { %s2931_s4 = smov 80   ;;  %s3631_s23 = smov 56  }
  0x33   :  { %204 = vmatpush2.bf16.msra.mxu0 %v2765_v12  ;;  %v217_v18 = vld [vmem:[%s3644_s0] sm:$0x1f]  ;;  %s2932_s0 = smov 112   ;;  %s3633_s1 = smov 48  }
  0x34   :  { %205 = vmatprep.subr.bf16.mxu0 %v2924_v1  ;;  %v218_v20 = vld [vmem:[%s3645_s5] sm:$0x1]  ;;  %v221_v21 = vrot.slane %v217_v18, 1  ;;  %v224_v22 = vrot.slane %v217_v18, 5  ;;  %s3634_s5 = smov 104   ;;  %s2936_s29 = smov 72  }
  0x35   :  { %v219_v23 = vadd.f32 %v218_v20, %v217_v18  ;;  %v2332_v56 = vld [vmem:[%s3646_s24] ss:$0 sm:$0xff]  ;;  %s2928_s24 = smov 88   ;;  %s3629_s25 = smov 8  }
  0x36   :  { %v2333_v58 = vld [vmem:[%s3647_s26] ss:$0 sm:$0xff]  ;;  %s3630_s26 = smov 40   ;;  %s3628_s3 = smov 16  }
  0x37   :  { %206 = vmatpush2.bf16.msra.mxu0 %v2766_v13  ;;  %v234_v29 = vrot.slane %v219_v23, %v233_v24  ;;  %v2768_v13 = vld [vmem:[%s3611_s9 + $0x8] sm:$0xff]   ;;  %v2334_v24 = vld [vmem:[%s3609_s7] ss:$0 sm:$0xff] }
  0x38   :  { %207 = vmatprep.subr.bf16.mxu0 %v2924_v1 }
  0x3b   :  { %208 = vmatpush2.bf16.msra.mxu0 %v2767_v14  ;;  %v2925_v14 = vmov 0.0  }
  0x3c   :  { %2516 = vmatprep.subr.bf16.mxu1 %v2925_v14  ;;  %2520 = vmatprep.mubr.msk.bf16.mxu1 %vm2926_vm6, %v2925_v14 }
  0x3d   :  { %2517 = vmatpush3.bf16.msra.mxu1 %v2768_v13  ;;  %2566 = vmatprep.subr.bf16.mxu0 %v2925_v14 }
  0x3e   :  { %210 = vmatmul.mubr.bf16.vlgmr.msra.gmra.mxu0 %v75_v16  ;;  %2518 = vmatprep.subr.bf16.mxu1 %v2925_v14 }
  0x3f   :  { %2568 = vmatprep.mubr.msk.bf16.mxu0 %vm2926_vm6, %v2925_v14 }
  0x41   :  { %2519 = vmatpush3.bf16.msra.mxu1 %v2769_v15 }
  0x42   :  { %2524 = vmatprep.subr.bf16.mxu1 %v2925_v14 }
  0xfe   :  { %v211_v25 = vpop.f32.mrf.mxu0 }
  0xff   :  { %v223_v26 = vadd.f32 %v221_v21, %v211_v25  ;;  %v226_v27 = vadd.f32 %v224_v22, %v211_v25 }
 0x100   :  { %v213_v28 = vpop.f32.mrf.mxu0 }
 0x101   :  { %v228_v30 = vrot.slane %v223_v26, 7  ;;  %v237_v32 = vrot.slane %v226_v27, 6  ;;  %v2335_v28 = vld [vmem:[%s3610_s8] ss:$0 sm:$0xff] }
 0x102   :  { %v214_v31 = vpop.f32.mrf.mxu0 }
 0x103   :  { %v240_v33 = vsel %vm239_vm1, %v219_v23, %v228_v30  ;;  %v252_v38 = vsel %vm251_vm5, %v237_v32, 0.0 }
 0x104   :  { %v215_v34 = vpop.f32.mrf.mxu0  ;;  %v242_v35 = vsel %vm241_vm2, %v240_v33, %v234_v29 }
 0x105   :  { %v244_v36 = vsel %vm243_vm3, %v242_v35, %v237_v32  ;;  %v2336_v34 = vld [vmem:[%s3612_s10] ss:$0 sm:$0xff] }
 0x106   :  { %v248_v37 = vsel %vm247_vm4, %v244_v36, 0.0 }
 0x107   :  { %249 = vadd.xlane.f32.xlu0 %v248_v37 }
 0x10b   :  { %253 = vadd.xlane.f32.xlu0 %v252_v38 }
 0x190   :  { %v250_v39 = vpop.xlane.xlu0 %249 }
 0x191   :  { %v256_v40 = vmul.f32 0.03125, %v250_v39 }
 0x193   :  { %v258_v41 = vsub.f32 %v244_v36, %v256_v40 }
 0x194   :  { %v254_v42 = vpop.xlane.xlu0 %253 }
 0x195   :  { %v257_v43 = vmul.f32 0.03125, %v254_v42  ;;  %v260_v44 = vmul.f32 %v258_v41, %v258_v41 }
 0x197   :  { %v259_v45 = vsub.f32 %v237_v32, %v257_v43  ;;  %v262_v46 = vsel %vm247_vm4, %v260_v44, 0.0 }
 0x198   :  { %263 = vadd.xlane.f32.xlu1 %v262_v46  ;;  %v3174_v46 = vld [vmem:[%s3648_s27] sm:$0xff] }
 0x199   :  { %v261_v47 = vmul.f32 %v259_v45, %v259_v45 }
 0x19b   :  { %v265_v48 = vsel %vm251_vm5, %v261_v47, 0.0 }
 0x19c   :  { %266 = vadd.xlane.f32.xlu1 %v265_v48 }
 0x221   :  { %v264_v49 = vpop.xlane.xlu1 %263 }
 0x222   :  { %v268_v50 = vmul.f32 0.03125, %v264_v49 }
 0x224   :  { %v270_v51 = vadd.f32 1e-05, %v268_v50  ;;  %v3180_v50 = vld [vmem:[%s3648_s27 + $0x8] sm:$0x3] }
 0x225   :  { %v267_v52 = vpop.xlane.xlu1 %266 }
 0x226   :  { %2798 = vrsqrt.f32 %v270_v51  ;;  %v269_v53 = vmul.f32 0.03125, %v267_v52 }
 0x228   :  { %v271_v54 = vadd.f32 1e-05, %v269_v53 }
 0x22a   :  { %2800 = vrsqrt.f32 %v271_v54 }
 0x233   :  { %v2799_v55 = vpop.eup %2798 }
 0x234   :  { %v274_v57 = vmul.f32 %v2799_v55, %v258_v41 }
 0x236   :  { %v282_v59 = vmul.f32 %v2332_v56, %v274_v57 }
 0x237   :  { %v2801_v60 = vpop.eup %2800 }
 0x238   :  { %v3117_v61 = vadd.f32 %v2333_v58, %v282_v59  ;;  %v275_v62 = vmul.f32 %v2801_v60, %v259_v45 }
 0x23a   :  { %v296_v63 = vsel %vm247_vm4, %v3117_v61, 0.0  ;;  %v283_v0 = vmul.f32 %v2332_v56, %v275_v62 }
 0x23b   :  { %297 = vadd.xlane.f32.xlu0 %v296_v63 }
 0x23c   :  { %v3121_v1 = vadd.f32 %v2333_v58, %v283_v0 }
 0x23e   :  { %v299_v2 = vsel %vm251_vm5, %v3121_v1, 0.0 }
 0x23f   :  { %300 = vadd.xlane.f32.xlu1 %v299_v2 }
 0x2c4   :  { %v298_v3 = vpop.xlane.xlu0 %297 }
 0x2c5   :  { %v302_v4 = vmul.f32 0.03125, %v298_v3 }
 0x2c7   :  { %v304_v5 = vsub.f32 %v3117_v61, %v302_v4 }
 0x2c8   :  { %v301_v6 = vpop.xlane.xlu1 %300 }
 0x2c9   :  { %v303_v7 = vmul.f32 0.03125, %v301_v6  ;;  %v306_v8 = vmul.f32 %v304_v5, %v304_v5 }
 0x2cb   :  { %v305_v9 = vsub.f32 %v3121_v1, %v303_v7  ;;  %v308_v10 = vsel %vm247_vm4, %v306_v8, 0.0 }
 0x2cc   :  { %309 = vadd.xlane.f32.xlu0 %v308_v10 }
 0x2cd   :  { %v307_v11 = vmul.f32 %v305_v9, %v305_v9 }
 0x2cf   :  { %v311_v12 = vsel %vm251_vm5, %v307_v11, 0.0 }
 0x2d0   :  { %312 = vadd.xlane.f32.xlu1 %v311_v12 }
 0x355   :  { %v310_v16 = vpop.xlane.xlu0 %309 }
 0x356   :  { %v314_v17 = vmul.f32 0.03125, %v310_v16 }
 0x358   :  { %v316_v18 = vadd.f32 1e-05, %v314_v17 }
 0x359   :  { %v313_v19 = vpop.xlane.xlu1 %312 }
 0x35a   :  { %2802 = vrsqrt.f32 %v316_v18  ;;  %v315_v20 = vmul.f32 0.03125, %v313_v19 }
 0x35c   :  { %v317_v21 = vadd.f32 1e-05, %v315_v20 }
 0x35e   :  { %2804 = vrsqrt.f32 %v317_v21 }
 0x367   :  { %v2803_v22 = vpop.eup %2802 }
 0x368   :  { %v320_v23 = vmul.f32 %v2803_v22, %v304_v5 }
 0x36a   :  { %v328_v27 = vmul.f32 %v2334_v24, %v320_v23 }
 0x36b   :  { %v2805_v25 = vpop.eup %2804 }
 0x36c   :  { %v321_v26 = vmul.f32 %v2805_v25, %v305_v9  ;;  %v336_v30 = vadd.f32 %v2335_v28, %v328_v27 }
 0x36e   :  { %v329_v29 = vmul.f32 %v2334_v24, %v321_v26 }
 0x370   :  { %v337_v31 = vadd.f32 %v2335_v28, %v329_v29 }
 0x372   :  { %v338_v32 = vpack.c.bf16 %v337_v31, %v336_v30 }
 0x374   :  { %2521 = vmatmul.mubr.msk.bf16.vlgmr.msra.gmra.mxu1 %vm247_vm4, %v338_v32 }
 0x375   :  { %2526 = vmatprep.mubr.msk.bf16.mxu1 %vm2926_vm6, %v2925_v14 }
 0x434   :  { %v399_v33 = vpop.f32.mrf.mxu1 }
 0x435   :  { %v400_v37 = vadd.f32 %v2336_v34, %v399_v33 }
 0x436   :  { %v2522_v35 = vpop.f32.mrf.mxu1 }
 0x437   :  { %v406_v42 = vmul.f32 0.35355338, %v400_v37 }
 0x438   :  { %v402_v36 = vpop.f32.mrf.mxu1 }
 0x439   :  { %v403_v38 = vadd.f32 %v2336_v34, %v402_v36 }
 0x43a   :  { %v2523_v39 = vpop.f32.mrf.mxu1 }
 0x43b   :  { %v3155_v40 = vpack.c.bf16 %v403_v38, %v400_v37  ;;  %v407_v41 = vmul.f32 0.35355338, %v403_v38 }
 0x43d   :  { %411 = vrot.lane.b32.xlu0 %v3155_v40, %s2927_s2  ;;  %v3161_v43 = vpack.c.bf16 %v407_v41, %v406_v42 }
 0x441   :  { %538 = vrot.lane.b32.xlu0 %v3155_v40, %s2928_s24 }
 0x445   :  { %536 = vrot.lane.b32.xlu0 %v3161_v43, %s2929_s6 }
 0x4af   :  { %v412_v44 = vpop.permute.xlu0 %411 }
 0x4b0   :  { %v418_v45 = vsel %vm413_vm7, %v412_v44, 0 }
 0x4b1   :  { %2525 = vmatpush3.bf16.xpose.msra.mxu1 %v418_v45 }
 0x4b2   :  { %2530 = vmatprep.subr.bf16.mxu1 %v2925_v14 }
 0x4b3   :  { %v539_v12 = vpop.permute.xlu0 %538 }
 0x4b4   :  { %v544_v15 = vsel %vm413_vm7, %v539_v12, 0 }
 0x4b7   :  { %v537_v16 = vpop.permute.xlu0 %536 }
 0x4b8   :  { %2527 = vmatmul.mubr.msk.bf16.vlgmr.msra.gmra.mxu1 %vm413_vm7, %v3161_v43 }
 0x4b9   :  { %2532 = vmatprep.mubr.msk.bf16.mxu1 %vm2926_vm6, %v2925_v14 }
 0x578   :  { %v454_v47 = vpop.f32.mrf.mxu1 }
 0x579   :  { %v455_v48 = vadd.f32 %v454_v47, %v3174_v46 }
 0x57a   :  { %v2528_v49 = vpop.f32.mrf.mxu1 }
 0x57b   :  { %v462_v51 = vsel %vm461_vm8, %v455_v48, -inf }
 0x57c   :  { %463 = vmax.xlane.f32.xlu1 %v462_v51  ;;  %v457_v52 = vpop.f32.mrf.mxu1 }
 0x57d   :  { %v458_v53 = vadd.f32 %v457_v52, %v3180_v50 }
 0x57e   :  { %v2529_v54 = vpop.f32.mrf.mxu1 }
 0x57f   :  { %v466_v55 = vsel %vm465_vm9, %v458_v53, -inf }
 0x580   :  { %467 = vmax.xlane.f32.xlu1 %v466_v55 }
 0x605   :  { %v464_v56 = vpop.xlane.xlu1 %463 }
 0x606   :  { %v469_v57 = vsub.f32 %v455_v48, %v464_v56 }
 0x608   :  { %v471_v58 = vmul.f32 1.442695, %v469_v57 }
 0x609   :  { %v468_v59 = vpop.xlane.xlu1 %467 }
 0x60a   :  { %2806 = vpow2.f32 %v471_v58  ;;  %v470_v60 = vsub.f32 %v458_v53, %v468_v59 }
 0x60c   :  { %v473_v62 = vmul.f32 1.442695, %v470_v60 }
 0x60e   :  { %2808 = vpow2.f32 %v473_v62 }
 0x617   :  { %v2807_v63 = vpop.eup %2806 }
 0x618   :  { %v475_v0 = vsel %vm461_vm8, %v2807_v63, 0.0 }
 0x619   :  { %476 = vadd.xlane.f32.xlu1 %v475_v0 }
 0x61b   :  { %v2809_v2 = vpop.eup %2808 }
 0x61c   :  { %v478_v3 = vsel %vm465_vm9, %v2809_v2, 0.0 }
 0x61d   :  { %479 = vadd.xlane.f32.xlu1 %v478_v3 }
 0x62e   :  { %486 = vrot.lane.b32.xlu1 %v3155_v40, %s2930_s30 }
 0x6a2   :  { %v477_v4 = vpop.xlane.xlu1 %476 }
 0x6a3   :  { %2810 = vrcp.f32 %v477_v4 }
 0x6a6   :  { %v480_v5 = vpop.xlane.xlu1 %479 }
 0x6a7   :  { %2812 = vrcp.f32 %v480_v5 }
 0x6aa   :  { %v487_v6 = vpop.permute.xlu1 %486 }
 0x6ab   :  { %v492_v7 = vsel %vm241_vm2, %v487_v6, 0 }
 0x6ac   :  { %2531 = vmatpush3.bf16.msra.mxu1 %v492_v7 }
 0x6ad   :  { %2536 = vmatprep.subr.bf16.mxu1 %v2925_v14 }
 0x6b0   :  { %v2811_v8 = vpop.eup %2810 }
 0x6b1   :  { %v483_v10 = vmul.f32 %v2811_v8, %v2807_v63 }
 0x6b4   :  { %v2813_v9 = vpop.eup %2812 }
 0x6b5   :  { %v484_v11 = vmul.f32 %v2813_v9, %v2809_v2 }
 0x6b7   :  { %v485_v13 = vpack.c.bf16 %v484_v11, %v483_v10 }
 0x6b9   :  { %2533 = vmatmul.mubr.msk.bf16.vlgmr.msra.gmra.mxu1 %vm461_vm8, %v485_v13 }
 0x6ba   :  { %2537 = vmatpush3.bf16.xpose.msra.mxu1 %v544_v15  ;;  %2538 = vmatprep.mubr.msk.bf16.mxu1 %vm2926_vm6, %v2925_v14 }
 0x6bb   :  { %2542 = vmatprep.subr.bf16.mxu1 %v2925_v14 }
 0x6c1   :  { %2539 = vmatmul.mubr.msk.bf16.vlgmr.msra.gmra.mxu1 %vm413_vm7, %v537_v16 }
 0x6c2   :  { %2544 = vmatprep.mubr.msk.bf16.mxu1 %vm2926_vm6, %v2925_v14 }
 0x779   :  { %v3199_v17 = vpop.f32.mrf.mxu1 }
 0x77b   :  { %v2534_v18 = vpop.f32.mrf.mxu1 }
 0x77d   :  { %v3201_v19 = vpop.f32.mrf.mxu1 }
 0x77f   :  { %v2535_v20 = vpop.f32.mrf.mxu1 }
 0x781   :  { %v580_v21 = vpop.f32.mrf.mxu1 }
 0x782   :  { %v581_v22 = vadd.f32 %v580_v21, %v3174_v46 }
 0x783   :  { %v2540_v23 = vpop.f32.mrf.mxu1 }
 0x784   :  { %v587_v24 = vsel %vm461_vm8, %v581_v22, -inf }
 0x785   :  { %588 = vmax.xlane.f32.xlu0 %v587_v24  ;;  %v583_v25 = vpop.f32.mrf.mxu1 }
 0x786   :  { %v584_v26 = vadd.f32 %v583_v25, %v3180_v50 }
 0x787   :  { %v2541_v27 = vpop.f32.mrf.mxu1 }
 0x788   :  { %v590_v28 = vsel %vm465_vm9, %v584_v26, -inf }
 0x789   :  { %591 = vmax.xlane.f32.xlu1 %v590_v28 }
 0x79a   :  { %661 = vrot.lane.b32.xlu1 %v3155_v40, %s2931_s4 }
 0x79e   :  { %659 = vrot.lane.b32.xlu1 %v3161_v43, %s2932_s0 }
 0x80e   :  { %v589_v29 = vpop.xlane.xlu0 %588 }
 0x80f   :  { %v593_v30 = vsub.f32 %v581_v22, %v589_v29 }
 0x811   :  { %v595_v31 = vmul.f32 1.442695, %v593_v30 }
 0x812   :  { %v592_v32 = vpop.xlane.xlu1 %591 }
 0x813   :  { %2814 = vpow2.f32 %v595_v31  ;;  %v594_v33 = vsub.f32 %v584_v26, %v592_v32 }
 0x815   :  { %v597_v34 = vmul.f32 1.442695, %v594_v33 }
 0x816   :  { %v662_v51 = vpop.permute.xlu1 %661 }
 0x817   :  { %2816 = vpow2.f32 %v597_v34  ;;  %v667_v53 = vsel %vm413_vm7, %v662_v51, 0 }
 0x81a   :  { %v660_v54 = vpop.permute.xlu1 %659 }
 0x820   :  { %v2815_v35 = vpop.eup %2814 }
 0x821   :  { %v599_v36 = vsel %vm461_vm8, %v2815_v35, 0.0 }
 0x822   :  { %600 = vadd.xlane.f32.xlu0 %v599_v36 }
 0x824   :  { %v2817_v37 = vpop.eup %2816 }
 0x825   :  { %v602_v38 = vsel %vm465_vm9, %v2817_v37, 0.0 }
 0x826   :  { %603 = vadd.xlane.f32.xlu0 %v602_v38 }
 0x83c   :  { %610 = vrot.lane.b32.xlu0 %v3155_v40, %s3631_s23  ;;  %s3632_s23 = smov 24  }
 0x8ab   :  { %v601_v39 = vpop.xlane.xlu0 %600 }
 0x8ac   :  { %2818 = vrcp.f32 %v601_v39 }
 0x8af   :  { %v604_v41 = vpop.xlane.xlu0 %603 }
 0x8b0   :  { %2820 = vrcp.f32 %v604_v41 }
 0x8b3   :  { %v611_v42 = vpop.permute.xlu0 %610 }
 0x8b4   :  { %v616_v44 = vsel %vm241_vm2, %v611_v42, 0 }
 0x8b5   :  { %2543 = vmatpush3.bf16.msra.mxu1 %v616_v44 }
 0x8b6   :  { %2548 = vmatprep.subr.bf16.mxu1 %v2925_v14 }
 0x8b9   :  { %v2819_v45 = vpop.eup %2818 }
 0x8ba   :  { %v607_v48 = vmul.f32 %v2819_v45, %v2815_v35 }
 0x8bd   :  { %v2821_v47 = vpop.eup %2820 }
 0x8be   :  { %v608_v49 = vmul.f32 %v2821_v47, %v2817_v37 }
 0x8c0   :  { %v609_v52 = vpack.c.bf16 %v608_v49, %v607_v48 }
 0x8c2   :  { %2545 = vmatmul.mubr.msk.bf16.vlgmr.msra.gmra.mxu1 %vm461_vm8, %v609_v52 }
 0x8c3   :  { %2549 = vmatpush3.bf16.xpose.msra.mxu1 %v667_v53  ;;  %2550 = vmatprep.mubr.msk.bf16.mxu1 %vm2926_vm6, %v2925_v14 }
 0x8c4   :  { %2554 = vmatprep.subr.bf16.mxu1 %v2925_v14 }
 0x8ca   :  { %2551 = vmatmul.mubr.msk.bf16.vlgmr.msra.gmra.mxu1 %vm413_vm7, %v660_v54 }
 0x8cb   :  { %2556 = vmatprep.mubr.msk.bf16.mxu1 %vm2926_vm6, %v2925_v14 }
 0x982   :  { %v3225_v55 = vpop.f32.mrf.mxu1 }
 0x984   :  { %v2546_v56 = vpop.f32.mrf.mxu1 }
 0x986   :  { %v3227_v57 = vpop.f32.mrf.mxu1 }
 0x987   :  { %v2726_v58 = vpack.i.bf16 %v3227_v57, %v3225_v55 }
 0x988   :  { %v2547_v59 = vpop.f32.mrf.mxu1 }
 0x98a   :  { %v703_v60 = vpop.f32.mrf.mxu1 }
 0x98b   :  { %v704_v62 = vadd.f32 %v703_v60, %v3174_v46 }
 0x98c   :  { %v2552_v63 = vpop.f32.mrf.mxu1 }
 0x98d   :  { %v710_v0 = vsel %vm461_vm8, %v704_v62, -inf }
 0x98e   :  { %711 = vmax.xlane.f32.xlu1 %v710_v0  ;;  %v706_v2 = vpop.f32.mrf.mxu1 }
 0x98f   :  { %v707_v3 = vadd.f32 %v706_v2, %v3180_v50 }
 0x990   :  { %v2553_v4 = vpop.f32.mrf.mxu1 }
 0x991   :  { %v713_v5 = vsel %vm465_vm9, %v707_v3, -inf  ;;  %v2771_v4 = vld [vmem:[%s3613_s11] sm:$0xff]  }
 0x992   :  { %714 = vmax.xlane.f32.xlu0 %v713_v5 }
 0x99f   :  { %733 = vrot.lane.b32.xlu1 %v3155_v40, %s3633_s1  ;;  %s3654_s1 = smov 16  }
 0x9a3   :  { %782 = vrot.lane.b32.xlu1 %v3161_v43, %s3634_s5 }
 0xa17   :  { %v712_v6 = vpop.xlane.xlu1 %711 }
 0xa18   :  { %v716_v7 = vsub.f32 %v704_v62, %v712_v6 }
 0xa1a   :  { %v718_v8 = vmul.f32 1.442695, %v716_v7 }
 0xa1b   :  { %v734_v9 = vpop.permute.xlu1 %733  ;;  %v715_v10 = vpop.xlane.xlu0 %714 }
 0xa1c   :  { %2822 = vpow2.f32 %v718_v8  ;;  %v739_v11 = vsel %vm241_vm2, %v734_v9, 0  ;;  %v717_v12 = vsub.f32 %v707_v3, %v715_v10 }
 0xa1d   :  { %2555 = vmatpush3.bf16.msra.mxu1 %v739_v11 }
 0xa1e   :  { %v720_v13 = vmul.f32 1.442695, %v717_v12  ;;  %2560 = vmatprep.subr.bf16.mxu1 %v2925_v14 }
 0xa1f   :  { %v783_v29 = vpop.permute.xlu1 %782 }
 0xa20   :  { %2824 = vpow2.f32 %v720_v13 }
 0xa29   :  { %v2823_v15 = vpop.eup %2822 }
 0xa2a   :  { %v722_v16 = vsel %vm461_vm8, %v2823_v15, 0.0 }
 0xa2b   :  { %723 = vadd.xlane.f32.xlu0 %v722_v16 }
 0xa2d   :  { %v2825_v18 = vpop.eup %2824 }
 0xa2e   :  { %v725_v43 = vsel %vm465_vm9, %v2825_v18, 0.0 }
 0xa2f   :  { %726 = vadd.xlane.f32.xlu0 %v725_v43 }
 0xa45   :  { %784 = vrot.lane.b32.xlu0 %v3155_v40, %s2936_s29 }
 0xab4   :  { %v724_v20 = vpop.xlane.xlu0 %723 }
 0xab5   :  { %2826 = vrcp.f32 %v724_v20 }
 0xab8   :  { %v727_v21 = vpop.xlane.xlu0 %726 }
 0xab9   :  { %2828 = vrcp.f32 %v727_v21 }
 0xabc   :  { %v785_v26 = vpop.permute.xlu0 %784 }
 0xabd   :  { %v790_v28 = vsel %vm413_vm7, %v785_v26, 0 }
 0xac2   :  { %v2827_v22 = vpop.eup %2826 }
 0xac3   :  { %v730_v24 = vmul.f32 %v2827_v22, %v2823_v15 }
 0xac6   :  { %v2829_v23 = vpop.eup %2828 }
 0xac7   :  { %v731_v25 = vmul.f32 %v2829_v23, %v2825_v18 }
 0xac9   :  { %v732_v27 = vpack.c.bf16 %v731_v25, %v730_v24 }
 0xacb   :  { %2557 = vmatmul.mubr.msk.bf16.vlgmr.msra.gmra.mxu1 %vm461_vm8, %v732_v27 }
 0xacc   :  { %2561 = vmatpush3.bf16.xpose.msra.mxu1 %v790_v28  ;;  %2562 = vmatprep.mubr.msk.bf16.mxu1 %vm2926_vm6, %v2925_v14 }
 0xacd   :  { %2572 = vmatprep.subr.bf16.mxu1 %v2925_v14 }
 0xad3   :  { %2563 = vmatmul.mubr.msk.bf16.vlgmr.msra.gmra.mxu1 %vm413_vm7, %v783_v29 }
 0xad4   :  { %2576 = vmatprep.mubr.msk.bf16.mxu1 %vm2926_vm6, %v2925_v14 }
 0xb8b   :  { %v775_v30 = vpop.f32.mrf.mxu1 }
 0xb8d   :  { %v2558_v31 = vpop.f32.mrf.mxu1 }
 0xb8f   :  { %v778_v32 = vpop.f32.mrf.mxu1 }
 0xb90   :  { %v2731_v33 = vpack.i.bf16 %v778_v32, %v775_v30 }
 0xb91   :  { %v2559_v34 = vpop.f32.mrf.mxu1 }
 0xb93   :  { %v826_v35 = vpop.f32.mrf.mxu1 }
 0xb94   :  { %v827_v36 = vadd.f32 %v826_v35, %v3174_v46 }
 0xb95   :  { %v2564_v37 = vpop.f32.mrf.mxu1 }
 0xb96   :  { %v833_v38 = vsel %vm461_vm8, %v827_v36, -inf }
 0xb97   :  { %834 = vmax.xlane.f32.xlu1 %v833_v38  ;;  %v829_v39 = vpop.f32.mrf.mxu1 }
 0xb98   :  { %v830_v41 = vadd.f32 %v829_v39, %v3180_v50 }
 0xb99   :  { %v2565_v42 = vpop.f32.mrf.mxu1 }
 0xb9a   :  { %v836_v44 = vsel %vm465_vm9, %v830_v41, -inf }
 0xb9b   :  { %837 = vmax.xlane.f32.xlu0 %v836_v44 }
 0xc20   :  { %v835_v45 = vpop.xlane.xlu1 %834 }
 0xc21   :  { %v839_v47 = vsub.f32 %v827_v36, %v835_v45 }
 0xc23   :  { %v841_v48 = vmul.f32 1.442695, %v839_v47 }
 0xc24   :  { %v838_v49 = vpop.xlane.xlu0 %837 }
 0xc25   :  { %2830 = vpow2.f32 %v841_v48  ;;  %v840_v51 = vsub.f32 %v830_v41, %v838_v49  ;;  %v2772_v48 = vld [vmem:[%s3617_s15 + $0x8] sm:$0xff]   ;;  %v2773_v49 = vld [vmem:[%s3617_s15] sm:$0xff]  }
 0xc27   :  { %v843_v52 = vmul.f32 1.442695, %v840_v51 }
 0xc29   :  { %2832 = vpow2.f32 %v843_v52 }
 0xc32   :  { %v2831_v53 = vpop.eup %2830 }
 0xc33   :  { %v845_v54 = vsel %vm461_vm8, %v2831_v53, 0.0 }
 0xc34   :  { %846 = vadd.xlane.f32.xlu0 %v845_v54 }
 0xc36   :  { %v2833_v56 = vpop.eup %2832 }
 0xc37   :  { %v848_v59 = vsel %vm465_vm9, %v2833_v56, 0.0 }
 0xc38   :  { %849 = vadd.xlane.f32.xlu1 %v848_v59 }
 0xc49   :  { %2727 = vrot.lane.b32.xlu1 %v2726_v58, %s3629_s25  ;;  %s3655_s25 = smov 24  }
 0xc4a   :  { %856 = vrot.lane.b32.xlu0 %v3155_v40, %s3630_s26  ;;  %v2770_v40 = vld [vmem:[%s3613_s11 + $0x8] sm:$0xff]  }
 0xc4b   :  { %2573 = vmatpush3.bf16.msra.mxu1 %v2770_v40 }
 0xc4c   :  { %2574 = vmatprep.subr.bf16.mxu1 %v2925_v14 }
 0xc4d   :  { %2732 = vrot.lane.b32.xlu1 %v2731_v33, %s3628_s3 }
 0xc4f   :  { %2575 = vmatpush3.bf16.msra.mxu1 %v2771_v4 }
 0xc50   :  { %2588 = vmatprep.subr.bf16.mxu1 %v2925_v14 }
 0xcbd   :  { %v847_v60 = vpop.xlane.xlu0 %846 }
 0xcbe   :  { %2834 = vrcp.f32 %v847_v60 }
 0xcc1   :  { %v850_v62 = vpop.xlane.xlu1 %849  ;;  %v857_v63 = vpop.permute.xlu0 %856 }
 0xcc2   :  { %2836 = vrcp.f32 %v850_v62  ;;  %v862_v0 = vsel %vm241_vm2, %v857_v63, 0  ;;  %v2352_v63 = vld [vmem:[%s3615_s13] ss:$0 sm:$0xff] }
 0xcc3   :  { %2567 = vmatpush3.bf16.msra.mxu0 %v862_v0 }
 0xcc4   :  { %2580 = vmatprep.subr.bf16.mxu0 %v2925_v14 }
 0xcc5   :  { %v2728_v10 = vpop.permute.xlu1 %2727 }
 0xcc6   :  { %v2730_v12 = vunpack.i.h.bf16 %v2728_v10  ;;  %v2729_v13 = vunpack.i.l.bf16 %v2728_v10  ;;  %v2779_v10 = vld [vmem:[%s3619_s17 + $0x10] sm:$0xff]  }
 0xcc8   :  { %v930_v43 = vsel %vm413_vm7, %v3201_v19, %v2730_v12  ;;  %v929_v20 = vsel %vm413_vm7, %v3199_v17, %v2729_v13  ;;  %v2348_v17 = vld [vmem:[%s3614_s12] ss:$0 sm:$0xff] }
 0xcc9   :  { %v2733_v11 = vpop.permute.xlu1 %2732  ;;  %v2781_v12 = vld [vmem:[%s3619_s17] sm:$0xff]  }
 0xcca   :  { %v2735_v15 = vunpack.i.h.bf16 %v2733_v11  ;;  %v2734_v16 = vunpack.i.l.bf16 %v2733_v11  ;;  %v2780_v11 = vld [vmem:[%s3619_s17 + $0x8] sm:$0xff]   ;;  %v2354_v13 = vld [vmem:[%s3618_s16] ss:$0 sm:$0xff] }
 0xccb   :  { %v2835_v2 = vpop.eup %2834 }
 0xccc   :  { %v853_v57 = vmul.f32 %v2835_v2, %v2831_v53  ;;  %v932_v23 = vsel %vm931_vm10, %v929_v20, %v2734_v16  ;;  %v933_v24 = vsel %vm931_vm10, %v930_v43, %v2735_v15 }
 0xccf   :  { %v2837_v55 = vpop.eup %2836 }
 0xcd0   :  { %v854_v58 = vmul.f32 %v2837_v55, %v2833_v56 }
 0xcd2   :  { %v855_v3 = vpack.c.bf16 %v854_v58, %v853_v57  ;;  %v2353_v57 = vld [vmem:[%s3616_s14] ss:$0 sm:$0xff] }
 0xcd4   :  { %2569 = vmatmul.mubr.msk.bf16.vlgmr.msra.gmra.mxu0 %vm461_vm8, %v855_v3 }
 0xcd5   :  { %2584 = vmatprep.mubr.msk.bf16.mxu0 %vm2926_vm6, %v2925_v14  ;;  %2581 = vmatpush3.bf16.msra.mxu0 %v2772_v48 }
 0xcd6   :  { %2582 = vmatprep.subr.bf16.mxu0 %v2925_v14 }
 0xcd9   :  { %2583 = vmatpush3.bf16.msra.mxu0 %v2773_v49 }
 0xcda   :  { %2608 = vmatprep.subr.bf16.mxu0 %v2925_v14 }
 0xd94   :  { %v898_v5 = vpop.f32.mrf.mxu0 }
 0xd96   :  { %v2570_v6 = vpop.f32.mrf.mxu0 }
 0xd97   :  { %v2775_v6 = vld [vmem:[%s3619_s17 + $0x30] sm:$0xff]  }
 0xd98   :  { %v901_v7 = vpop.f32.mrf.mxu0 }
 0xd99   :  { %v2736_v8 = vpack.i.bf16 %v901_v7, %v898_v5  ;;  %v2774_v5 = vld [vmem:[%s3619_s17 + $0x38] sm:$0xff]   ;;  %v2776_v7 = vld [vmem:[%s3619_s17 + $0x28] sm:$0xff]  }
 0xd9a   :  { %v2571_v9 = vpop.f32.mrf.mxu0 }
 0xd9b   :  { %2737 = vrot.lane.b32.xlu1 %v2736_v8, %s3632_s23  ;;  %v2777_v8 = vld [vmem:[%s3619_s17 + $0x20] sm:$0xff]   ;;  %v2778_v9 = vld [vmem:[%s3619_s17 + $0x18] sm:$0xff]  }
 0xe0d   :  { %v2738_v18 = vpop.permute.xlu1 %2737 }
 0xe0e   :  { %v2740_v21 = vunpack.i.h.bf16 %v2738_v18  ;;  %v2739_v22 = vunpack.i.l.bf16 %v2738_v18 }
 0xe10   :  { %v936_v25 = vsel %vm934_vm11, %v933_v24, %v2740_v21  ;;  %v935_v26 = vsel %vm934_vm11, %v932_v23, %v2739_v22 }
 0xe11   :  { %v937_v27 = vpack.c.bf16 %v936_v25, %v935_v26 }
 0xe13   :  { %2577 = vmatmul.mubr.msk.bf16.vlgmr.msra.gmra.mxu1 %vm247_vm4, %v937_v27 }
 0xe14   :  { %2604 = vmatprep.mubr.msk.bf16.mxu1 %vm2926_vm6, %v2925_v14  ;;  %2589 = vmatpush3.bf16.msra.mxu1 %v2774_v5 }
 0xe15   :  { %2590 = vmatprep.subr.bf16.mxu1 %v2925_v14 }
 0xe18   :  { %2591 = vmatpush3.bf16.msra.mxu1 %v2775_v6 }
 0xe19   :  { %2592 = vmatprep.subr.bf16.mxu1 %v2925_v14 }
 0xe1c   :  { %2593 = vmatpush3.bf16.msra.mxu1 %v2776_v7  ;;  %v2372_v7 = vld [vmem:[%s3610_s8 + $0x1] ss:$0 sm:$0xff] }
 0xe1d   :  { %2594 = vmatprep.subr.bf16.mxu1 %v2925_v14 }
 0xe20   :  { %2595 = vmatpush3.bf16.msra.mxu1 %v2777_v8 }
 0xe21   :  { %2596 = vmatprep.subr.bf16.mxu1 %v2925_v14 }
 0xe24   :  { %2597 = vmatpush3.bf16.msra.mxu1 %v2778_v9 }
 0xe25   :  { %2598 = vmatprep.subr.bf16.mxu1 %v2925_v14 }
 0xe28   :  { %2599 = vmatpush3.bf16.msra.mxu1 %v2779_v10 }
 0xe29   :  { %2600 = vmatprep.subr.bf16.mxu1 %v2925_v14 }
 0xe2c   :  { %2601 = vmatpush3.bf16.msra.mxu1 %v2780_v11 }
 0xe2d   :  { %2602 = vmatprep.subr.bf16.mxu1 %v2925_v14 }
 0xe30   :  { %2603 = vmatpush3.bf16.msra.mxu1 %v2781_v12 }
 0xe31   :  { %2634 = vmatprep.subr.bf16.mxu1 %v2925_v14 }
 0xed3   :  { %v998_v19 = vpop.f32.mrf.mxu1 }
 0xed4   :  { %v999_v28 = vadd.f32 %v2348_v17, %v998_v19 }
 0xed5   :  { %v2578_v29 = vpop.f32.mrf.mxu1 }
 0xed6   :  { %v3295_v30 = vadd.f32 %v999_v28, %v3117_v61 }
 0xed7   :  { %v1001_v31 = vpop.f32.mrf.mxu1 }
 0xed8   :  { %v1002_v32 = vadd.f32 %v2348_v17, %v1001_v31  ;;  %v1009_v33 = vsel %vm247_vm4, %v3295_v30, 0.0 }
 0xed9   :  { %1010 = vadd.xlane.f32.xlu0 %v1009_v33  ;;  %v2579_v34 = vpop.f32.mrf.mxu1 }
 0xeda   :  { %v3300_v35 = vadd.f32 %v1002_v32, %v3121_v1  ;;  %v2360_v34 = vld [vmem:[%s3620_s18] ss:$0 sm:$0xff] }
 0xedc   :  { %v1012_v36 = vsel %vm251_vm5, %v3300_v35, 0.0 }
 0xedd   :  { %1013 = vadd.xlane.f32.xlu1 %v1012_v36 }
 0xf62   :  { %v1011_v37 = vpop.xlane.xlu0 %1010 }
 0xf63   :  { %v1015_v38 = vmul.f32 0.03125, %v1011_v37 }
 0xf65   :  { %v1017_v39 = vsub.f32 %v3295_v30, %v1015_v38 }
 0xf66   :  { %v1014_v61 = vpop.xlane.xlu1 %1013 }
 0xf67   :  { %v1016_v41 = vmul.f32 0.03125, %v1014_v61  ;;  %v1019_v42 = vmul.f32 %v1017_v39, %v1017_v39 }
 0xf69   :  { %v1018_v44 = vsub.f32 %v3300_v35, %v1016_v41  ;;  %v1021_v45 = vsel %vm247_vm4, %v1019_v42, 0.0 }
 0xf6a   :  { %1022 = vadd.xlane.f32.xlu0 %v1021_v45 }
 0xf6b   :  { %v1020_v47 = vmul.f32 %v1018_v44, %v1018_v44 }
 0xf6d   :  { %v1024_v1 = vsel %vm251_vm5, %v1020_v47, 0.0 }
 0xf6e   :  { %1025 = vadd.xlane.f32.xlu0 %v1024_v1 }
 0xff3   :  { %v1023_v51 = vpop.xlane.xlu0 %1022 }
 0xff4   :  { %v1027_v52 = vmul.f32 0.03125, %v1023_v51 }
 0xff6   :  { %v1029_v53 = vadd.f32 1e-05, %v1027_v52 }
 0xff7   :  { %v1026_v54 = vpop.xlane.xlu0 %1025 }
 0xff8   :  { %2838 = vrsqrt.f32 %v1029_v53  ;;  %v1028_v56 = vmul.f32 0.03125, %v1026_v54 }
 0xffa   :  { %v1030_v59 = vadd.f32 1e-05, %v1028_v56 }
 0xffc   :  { %2840 = vrsqrt.f32 %v1030_v59  ;;  %v2782_v59 = vld [vmem:[%s3611_s9 + $0x18] sm:$0xff]  }
0x1005   :  { %v2839_v60 = vpop.eup %2838 }
0x1006   :  { %v1033_v62 = vmul.f32 %v2839_v60, %v1017_v39  ;;  %v2783_v60 = vld [vmem:[%s3611_s9 + $0x10] sm:$0xff]  }
0x1008   :  { %v1041_v55 = vmul.f32 %v2352_v63, %v1033_v62 }
0x1009   :  { %v2841_v0 = vpop.eup %2840 }
0x100a   :  { %v1034_v2 = vmul.f32 %v2841_v0, %v1018_v44  ;;  %v1049_v3 = vadd.f32 %v2353_v57, %v1041_v55 }
0x100c   :  { %v1042_v58 = vmul.f32 %v2352_v63, %v1034_v2 }
0x100e   :  { %v1050_v40 = vadd.f32 %v2353_v57, %v1042_v58 }
0x1010   :  { %v1051_v4 = vpack.c.bf16 %v1050_v40, %v1049_v3  ;;  %v2371_v40 = vld [vmem:[%s3609_s7 + $0x1] ss:$0 sm:$0xff]  ;;  %s3649_s7 = smov 104  }
0x1012   :  { %2585 = vmatmul.mubr.msk.bf16.vlgmr.msra.gmra.mxu0 %vm247_vm4, %v1051_v4 }
0x1013   :  { %2612 = vmatprep.mubr.msk.bf16.mxu0 %vm2926_vm6, %v2925_v14  ;;  %2609 = vmatpush3.bf16.msra.mxu0 %v2782_v59 }
0x1014   :  { %2610 = vmatprep.subr.bf16.mxu0 %v2925_v14 }
0x1017   :  { %2611 = vmatpush3.bf16.msra.mxu0 %v2783_v60 }
0x1018   :  { %2616 = vmatprep.subr.bf16.mxu0 %v2925_v14 }
0x10d2   :  { %v1112_v15 = vpop.f32.mrf.mxu0 }
0x10d3   :  { %v1113_v16 = vadd.f32 %v2354_v13, %v1112_v15 }
0x10d4   :  { %v2586_v18 = vpop.f32.mrf.mxu0 }
0x10d5   :  { %v2358_v43 = vmul.f32 -1.702, %v1113_v16 }
0x10d6   :  { %v1115_v20 = vpop.f32.mrf.mxu0 }
0x10d7   :  { %v1123_v21 = vmul.f32 1.442695, %v2358_v43  ;;  %v1116_v22 = vadd.f32 %v2354_v13, %v1115_v20  ;;  %v2378_v13 = vld [vmem:[%s3612_s10 + $0x1] ss:$0 sm:$0xff] }
0x10d8   :  { %v2587_v23 = vpop.f32.mrf.mxu0 }
0x10d9   :  { %2842 = vpow2.f32 %v1123_v21  ;;  %v2359_v24 = vmul.f32 -1.702, %v1116_v22 }
0x10db   :  { %v1125_v25 = vmul.f32 1.442695, %v2359_v24 }
0x10dd   :  { %2844 = vpow2.f32 %v1125_v25 }
0x10e6   :  { %v2843_v26 = vpop.eup %2842 }
0x10e7   :  { %v1127_v27 = vadd.f32 1.0, %v2843_v26 }
0x10e9   :  { %2846 = vrcp.f32 %v1127_v27 }
0x10ea   :  { %v2845_v17 = vpop.eup %2844 }
0x10eb   :  { %v1128_v19 = vadd.f32 1.0, %v2845_v17 }
0x10ed   :  { %2848 = vrcp.f32 %v1128_v19 }
0x10f6   :  { %v2847_v28 = vpop.eup %2846 }
0x10f7   :  { %v1133_v31 = vmul.f32 %v2847_v28, %v1113_v16 }
0x10fa   :  { %v2849_v29 = vpop.eup %2848 }
0x10fb   :  { %v1134_v32 = vmul.f32 %v2849_v29, %v1116_v22 }
0x10fd   :  { %v1135_v33 = vpack.c.bf16 %v1134_v32, %v1133_v31 }
0x10ff   :  { %2605 = vmatmul.mubr.bf16.vlgmr.msra.gmra.mxu1 %v1135_v33 }
0x1100   :  { %2636 = vmatprep.mubr.msk.bf16.mxu1 %vm2926_vm6, %v2925_v14 }
0x11bf   :  { %v1241_v36 = vpop.f32.mrf.mxu1 }
0x11c0   :  { %v1242_v37 = vadd.f32 %v2360_v34, %v1241_v36 }
0x11c1   :  { %v2606_v38 = vpop.f32.mrf.mxu1 }
0x11c2   :  { %v3366_v39 = vadd.f32 %v1242_v37, %v3295_v30 }
0x11c3   :  { %v1244_v61 = vpop.f32.mrf.mxu1 }
0x11c4   :  { %v1245_v41 = vadd.f32 %v2360_v34, %v1244_v61  ;;  %v1254_v42 = vsel %vm247_vm4, %v3366_v39, 0.0 }
0x11c5   :  { %1255 = vadd.xlane.f32.xlu0 %v1254_v42  ;;  %v2607_v44 = vpop.f32.mrf.mxu1 }
0x11c6   :  { %v3371_v45 = vadd.f32 %v1245_v41, %v3300_v35 }
0x11c8   :  { %v1257_v47 = vsel %vm251_vm5, %v3371_v45, 0.0 }
0x11c9   :  { %1258 = vadd.xlane.f32.xlu1 %v1257_v47 }
0x124e   :  { %v1256_v1 = vpop.xlane.xlu0 %1255 }
0x124f   :  { %v1260_v48 = vmul.f32 0.03125, %v1256_v1 }
0x1251   :  { %v1262_v49 = vsub.f32 %v3366_v39, %v1260_v48 }
0x1252   :  { %v1259_v30 = vpop.xlane.xlu1 %1258 }
0x1253   :  { %v1261_v51 = vmul.f32 0.03125, %v1259_v30  ;;  %v1264_v52 = vmul.f32 %v1262_v49, %v1262_v49 }
0x1255   :  { %v1263_v53 = vsub.f32 %v3371_v45, %v1261_v51  ;;  %v1266_v54 = vsel %vm247_vm4, %v1264_v52, 0.0 }
0x1256   :  { %1267 = vadd.xlane.f32.xlu0 %v1266_v54 }
0x1257   :  { %v1265_v56 = vmul.f32 %v1263_v53, %v1263_v53 }
0x1259   :  { %v1269_v35 = vsel %vm251_vm5, %v1265_v56, 0.0 }
0x125a   :  { %1270 = vadd.xlane.f32.xlu1 %v1269_v35 }
0x12df   :  { %v1268_v62 = vpop.xlane.xlu0 %1267 }
0x12e0   :  { %v1272_v63 = vmul.f32 0.03125, %v1268_v62 }
0x12e2   :  { %v1274_v0 = vadd.f32 1e-05, %v1272_v63 }
0x12e3   :  { %v1271_v2 = vpop.xlane.xlu1 %1270 }
0x12e4   :  { %2850 = vrsqrt.f32 %v1274_v0  ;;  %v1273_v55 = vmul.f32 0.03125, %v1271_v2 }
0x12e6   :  { %v1275_v57 = vadd.f32 1e-05, %v1273_v55 }
0x12e8   :  { %2852 = vrsqrt.f32 %v1275_v57 }
0x12f1   :  { %v2851_v58 = vpop.eup %2850 }
0x12f2   :  { %v1278_v3 = vmul.f32 %v2851_v58, %v1262_v49 }
0x12f4   :  { %v1286_v6 = vmul.f32 %v2371_v40, %v1278_v3 }
0x12f5   :  { %v2853_v4 = vpop.eup %2852 }
0x12f6   :  { %v1279_v5 = vmul.f32 %v2853_v4, %v1263_v53  ;;  %v1294_v9 = vadd.f32 %v2372_v7, %v1286_v6 }
0x12f8   :  { %v1287_v8 = vmul.f32 %v2371_v40, %v1279_v5 }
0x12fa   :  { %v1295_v10 = vadd.f32 %v2372_v7, %v1287_v8 }
0x12fc   :  { %v1296_v11 = vpack.c.bf16 %v1295_v10, %v1294_v9 }
0x12fe   :  { %2613 = vmatmul.mubr.msk.bf16.vlgmr.msra.gmra.mxu0 %vm247_vm4, %v1296_v11 }
0x12ff   :  { %2618 = vmatprep.mubr.msk.bf16.mxu0 %vm2926_vm6, %v2925_v14 }
0x13be   :  { %v1359_v12 = vpop.f32.mrf.mxu0 }
0x13bf   :  { %v1360_v18 = vadd.f32 %v2378_v13, %v1359_v12 }
0x13c0   :  { %v2614_v15 = vpop.f32.mrf.mxu0 }
0x13c1   :  { %v1366_v23 = vmul.f32 0.35355338, %v1360_v18 }
0x13c2   :  { %v1362_v16 = vpop.f32.mrf.mxu0 }
0x13c3   :  { %v1363_v43 = vadd.f32 %v2378_v13, %v1362_v16 }
0x13c4   :  { %v2615_v20 = vpop.f32.mrf.mxu0 }
0x13c5   :  { %v3399_v21 = vpack.c.bf16 %v1363_v43, %v1360_v18  ;;  %v1367_v22 = vmul.f32 0.35355338, %v1363_v43 }
0x13c7   :  { %1371 = vrot.lane.b32.xlu0 %v3399_v21, %s2927_s2  ;;  %v1368_v24 = vpack.c.bf16 %v1367_v22, %v1366_v23 }
0x13cb   :  { %1495 = vrot.lane.b32.xlu0 %v3399_v21, %s2928_s24 }
0x13cf   :  { %1493 = vrot.lane.b32.xlu0 %v1368_v24, %s2929_s6  ;;  %s3650_s6 = smov 48  }
0x13d3   :  { %1618 = vrot.lane.b32.xlu0 %v3399_v21, %s2931_s4 }
0x13d7   :  { %1741 = vrot.lane.b32.xlu0 %v3399_v21, %s2936_s29  ;;  %s3653_s29 = smov 8  }
0x1439   :  { %v1372_v25 = vpop.permute.xlu0 %1371 }
0x143a   :  { %v1377_v26 = vsel %vm413_vm7, %v1372_v25, 0 }
0x143b   :  { %2617 = vmatpush3.bf16.xpose.msra.mxu0 %v1377_v26  ;;  %v2900_v26 = vld [vmem:[%s3648_s27] sm:$0xff] }
0x143c   :  { %2622 = vmatprep.subr.bf16.mxu0 %v2925_v14 }
0x143d   :  { %v1496_v53 = vpop.permute.xlu0 %1495 }
0x143e   :  { %v1501_v62 = vsel %vm413_vm7, %v1496_v53, 0 }
0x1441   :  { %v1494_v60 = vpop.permute.xlu0 %1493 }
0x1442   :  { %2619 = vmatmul.mubr.msk.bf16.vlgmr.msra.gmra.mxu0 %vm413_vm7, %v1368_v24 }
0x1443   :  { %2624 = vmatprep.mubr.msk.bf16.mxu0 %vm2926_vm6, %v2925_v14 }
0x1445   :  { %v1619_v63 = vpop.permute.xlu0 %1618 }
0x1446   :  { %v1624_v0 = vsel %vm413_vm7, %v1619_v63, 0 }
0x1449   :  { %v1742_v2 = vpop.permute.xlu0 %1741 }
0x144a   :  { %v1747_v57 = vsel %vm413_vm7, %v1742_v2, 0 }
0x1502   :  { %v1413_v27 = vpop.f32.mrf.mxu0 }
0x1503   :  { %v1414_v17 = vadd.f32 %v1413_v27, %v3174_v46 }
0x1504   :  { %v2620_v19 = vpop.f32.mrf.mxu0 }
0x1505   :  { %v1420_v28 = vsel %vm461_vm8, %v1414_v17, -inf }
0x1506   :  { %1421 = vmax.xlane.f32.xlu1 %v1420_v28  ;;  %v1416_v29 = vpop.f32.mrf.mxu0  ;;  %v2901_v28 = vld [vmem:[%s3648_s27 + $0x8] sm:$0x3]  ;;  %s3651_s27 = smov 56  }
0x1507   :  { %v1417_v31 = vadd.f32 %v1416_v29, %v3180_v50 }
0x1508   :  { %v2621_v32 = vpop.f32.mrf.mxu0 }
0x1509   :  { %v1423_v33 = vsel %vm465_vm9, %v1417_v31, -inf }
0x150a   :  { %1424 = vmax.xlane.f32.xlu1 %v1423_v33 }
0x158f   :  { %v1422_v34 = vpop.xlane.xlu1 %1421 }
0x1590   :  { %v1426_v36 = vsub.f32 %v1414_v17, %v1422_v34 }
0x1592   :  { %v1428_v37 = vmul.f32 1.442695, %v1426_v36 }
0x1593   :  { %v1425_v38 = vpop.xlane.xlu1 %1424 }
0x1594   :  { %2854 = vpow2.f32 %v1428_v37  ;;  %v1427_v61 = vsub.f32 %v1417_v31, %v1425_v38 }
0x1596   :  { %v1430_v41 = vmul.f32 1.442695, %v1427_v61 }
0x1598   :  { %2856 = vpow2.f32 %v1430_v41 }
0x15a1   :  { %v2855_v42 = vpop.eup %2854 }
0x15a2   :  { %v1432_v44 = vsel %vm461_vm8, %v2855_v42, 0.0 }
0x15a3   :  { %1433 = vadd.xlane.f32.xlu1 %v1432_v44 }
0x15a5   :  { %v2857_v47 = vpop.eup %2856 }
0x15a6   :  { %v1435_v1 = vsel %vm465_vm9, %v2857_v47, 0.0 }
0x15a7   :  { %1436 = vadd.xlane.f32.xlu1 %v1435_v1 }
0x15b8   :  { %1443 = vrot.lane.b32.xlu1 %v3399_v21, %s2930_s30  ;;  %s3652_s30 = smov 40  }
0x15bc   :  { %1616 = vrot.lane.b32.xlu1 %v1368_v24, %s2932_s0 }
0x15c0   :  { %1739 = vrot.lane.b32.xlu1 %v1368_v24, %s3649_s7 }
0x162c   :  { %v1434_v48 = vpop.xlane.xlu1 %1433 }
0x162d   :  { %2858 = vrcp.f32 %v1434_v48 }
0x1630   :  { %v1437_v49 = vpop.xlane.xlu1 %1436 }
0x1631   :  { %2860 = vrcp.f32 %v1437_v49 }
0x1634   :  { %v1444_v30 = vpop.permute.xlu1 %1443 }
0x1635   :  { %v1449_v51 = vsel %vm241_vm2, %v1444_v30, 0 }
0x1636   :  { %2623 = vmatpush3.bf16.msra.mxu0 %v1449_v51 }
0x1637   :  { %2628 = vmatprep.subr.bf16.mxu0 %v2925_v14 }
0x1638   :  { %v1617_v55 = vpop.permute.xlu1 %1616 }
0x163a   :  { %v2859_v52 = vpop.eup %2858 }
0x163b   :  { %v1440_v56 = vmul.f32 %v2859_v52, %v2855_v42 }
0x163c   :  { %v1740_v58 = vpop.permute.xlu1 %1739 }
0x163e   :  { %v2861_v54 = vpop.eup %2860 }
0x163f   :  { %v1441_v35 = vmul.f32 %v2861_v54, %v2857_v47 }
0x1641   :  { %v1442_v59 = vpack.c.bf16 %v1441_v35, %v1440_v56 }
0x1643   :  { %2625 = vmatmul.mubr.msk.bf16.vlgmr.msra.gmra.mxu0 %vm461_vm8, %v1442_v59 }
0x1644   :  { %2629 = vmatpush3.bf16.xpose.msra.mxu0 %v1501_v62  ;;  %2630 = vmatprep.mubr.msk.bf16.mxu0 %vm2926_vm6, %v2925_v14 }
0x1645   :  { %2640 = vmatprep.subr.bf16.mxu0 %v2925_v14 }
0x164b   :  { %2631 = vmatmul.mubr.msk.bf16.vlgmr.msra.gmra.mxu0 %vm413_vm7, %v1494_v60 }
0x164c   :  { %2641 = vmatpush3.bf16.xpose.msra.mxu0 %v1624_v0  ;;  %2642 = vmatprep.mubr.msk.bf16.mxu0 %vm2926_vm6, %v2925_v14 }
0x164d   :  { %2652 = vmatprep.subr.bf16.mxu0 %v2925_v14 }
0x1653   :  { %2643 = vmatmul.mubr.msk.bf16.vlgmr.msra.gmra.mxu0 %vm413_vm7, %v1617_v55 }
0x1654   :  { %2653 = vmatpush3.bf16.xpose.msra.mxu0 %v1747_v57  ;;  %2654 = vmatprep.mubr.msk.bf16.mxu0 %vm2926_vm6, %v2925_v14 }
0x1655   :  { %2664 = vmatprep.subr.bf16.mxu0 %v2925_v14 }
0x165b   :  { %2655 = vmatmul.mubr.msk.bf16.vlgmr.msra.gmra.mxu0 %vm413_vm7, %v1740_v58 }
0x165c   :  { %2668 = vmatprep.mubr.msk.bf16.mxu0 %vm2926_vm6, %v2925_v14 }
0x1703   :  { %v3445_v3 = vpop.f32.mrf.mxu0 }
0x1705   :  { %v2626_v40 = vpop.f32.mrf.mxu0 }
0x1707   :  { %v3447_v4 = vpop.f32.mrf.mxu0 }
0x1709   :  { %v2627_v5 = vpop.f32.mrf.mxu0 }
0x170b   :  { %v1537_v6 = vpop.f32.mrf.mxu0 }
0x170c   :  { %v1538_v7 = vadd.f32 %v1537_v6, %v3174_v46 }
0x170d   :  { %v2632_v8 = vpop.f32.mrf.mxu0 }
0x170e   :  { %v1544_v9 = vsel %vm461_vm8, %v1538_v7, -inf }
0x170f   :  { %1545 = vmax.xlane.f32.xlu0 %v1544_v9  ;;  %v1540_v10 = vpop.f32.mrf.mxu0 }
0x1710   :  { %v1541_v11 = vadd.f32 %v1540_v10, %v3180_v50 }
0x1711   :  { %v2633_v12 = vpop.f32.mrf.mxu0 }
0x1712   :  { %v1547_v13 = vsel %vm465_vm9, %v1541_v11, -inf }
0x1713   :  { %1548 = vmax.xlane.f32.xlu1 %v1547_v13  ;;  %v1660_v15 = vpop.f32.mrf.mxu0 }
0x1714   :  { %v1661_v16 = vadd.f32 %v1660_v15, %v3174_v46 }
0x1715   :  { %v2644_v18 = vpop.f32.mrf.mxu0 }
0x1716   :  { %v1667_v43 = vsel %vm461_vm8, %v1661_v16, -inf }
0x1717   :  { %1668 = vmax.xlane.f32.xlu0 %v1667_v43  ;;  %v1663_v20 = vpop.f32.mrf.mxu0 }
0x1718   :  { %v1664_v22 = vadd.f32 %v1663_v20, %v3180_v50 }
0x1719   :  { %v2645_v23 = vpop.f32.mrf.mxu0 }
0x171a   :  { %v1670_v24 = vsel %vm465_vm9, %v1664_v22, -inf }
0x171b   :  { %1671 = vmax.xlane.f32.xlu0 %v1670_v24  ;;  %v1783_v25 = vpop.f32.mrf.mxu0 }
0x171c   :  { %v1784_v27 = vadd.f32 %v2900_v26, %v1783_v25 }
0x171d   :  { %v2656_v17 = vpop.f32.mrf.mxu0 }
0x171e   :  { %v1790_v46 = vsel %vm461_vm8, %v1784_v27, -inf }
0x171f   :  { %1791 = vmax.xlane.f32.xlu0 %v1790_v46  ;;  %v1786_v19 = vpop.f32.mrf.mxu0 }
0x1720   :  { %v1787_v50 = vadd.f32 %v2901_v28, %v1786_v19 }
0x1721   :  { %v2657_v29 = vpop.f32.mrf.mxu0 }
0x1722   :  { %v1793_v31 = vsel %vm465_vm9, %v1787_v50, -inf }
0x1723   :  { %1794 = vmax.xlane.f32.xlu1 %v1793_v31 }
0x1798   :  { %v1546_v32 = vpop.xlane.xlu0 %1545 }
0x1799   :  { %v1550_v33 = vsub.f32 %v1538_v7, %v1546_v32 }
0x179b   :  { %v1552_v34 = vmul.f32 1.442695, %v1550_v33  ;;  %v2784_v33 = vld [vmem:[%s3613_s11 + $0x18] sm:$0xff]  }
0x179c   :  { %v1549_v36 = vpop.xlane.xlu1 %1548  ;;  %2665 = vmatpush3.bf16.msra.mxu0 %v2784_v33 }
0x179d   :  { %2862 = vpow2.f32 %v1552_v34  ;;  %v1551_v37 = vsub.f32 %v1541_v11, %v1549_v36  ;;  %2666 = vmatprep.subr.bf16.mxu0 %v2925_v14 }
0x179f   :  { %v1554_v38 = vmul.f32 1.442695, %v1551_v37 }
0x17a0   :  { %v1669_v61 = vpop.xlane.xlu0 %1668 }
0x17a1   :  { %2864 = vpow2.f32 %v1554_v38  ;;  %v1673_v41 = vsub.f32 %v1661_v16, %v1669_v61 }
0x17a3   :  { %v1675_v42 = vmul.f32 1.442695, %v1673_v41 }
0x17a4   :  { %v1672_v44 = vpop.xlane.xlu0 %1671 }
0x17a5   :  { %2866 = vpow2.f32 %v1675_v42  ;;  %v1674_v47 = vsub.f32 %v1664_v22, %v1672_v44  ;;  %v2785_v44 = vld [vmem:[%s3613_s11 + $0x10] sm:$0xff]  }
0x17a6   :  { %2667 = vmatpush3.bf16.msra.mxu0 %v2785_v44  ;;  %v2789_v44 = vld [vmem:[%s3619_s17 + $0x70] sm:$0xff]  }
0x17a7   :  { %v1677_v1 = vmul.f32 1.442695, %v1674_v47  ;;  %2680 = vmatprep.subr.bf16.mxu0 %v2925_v14 }
0x17a8   :  { %v1792_v48 = vpop.xlane.xlu0 %1791 }
0x17a9   :  { %2868 = vpow2.f32 %v1677_v1  ;;  %v1796_v49 = vsub.f32 %v1784_v27, %v1792_v48 }
0x17aa   :  { %v2863_v30 = vpop.eup %2862 }
0x17ab   :  { %v1798_v51 = vmul.f32 1.442695, %v1796_v49  ;;  %v1556_v52 = vsel %vm461_vm8, %v2863_v30, 0.0 }
0x17ac   :  { %1557 = vadd.xlane.f32.xlu0 %v1556_v52  ;;  %v1795_v0 = vpop.xlane.xlu1 %1794 }
0x17ad   :  { %2870 = vpow2.f32 %v1798_v51  ;;  %v1797_v2 = vsub.f32 %v1787_v50, %v1795_v0 }
0x17ae   :  { %v2865_v53 = vpop.eup %2864 }
0x17af   :  { %v1559_v54 = vsel %vm465_vm9, %v2865_v53, 0.0  ;;  %v1800_v55 = vmul.f32 1.442695, %v1797_v2 }
0x17b0   :  { %1560 = vadd.xlane.f32.xlu1 %v1559_v54 }
0x17b1   :  { %2872 = vpow2.f32 %v1800_v55 }
0x17b2   :  { %v2867_v56 = vpop.eup %2866 }
0x17b3   :  { %v1679_v35 = vsel %vm461_vm8, %v2867_v56, 0.0 }
0x17b4   :  { %1680 = vadd.xlane.f32.xlu0 %v1679_v35 }
0x17b6   :  { %v2869_v59 = vpop.eup %2868 }
0x17b7   :  { %v1682_v60 = vsel %vm465_vm9, %v2869_v59, 0.0 }
0x17b8   :  { %1683 = vadd.xlane.f32.xlu1 %v1682_v60 }
0x17ba   :  { %v2871_v62 = vpop.eup %2870 }
0x17bb   :  { %v1802_v63 = vsel %vm461_vm8, %v2871_v62, 0.0 }
0x17bc   :  { %1803 = vadd.xlane.f32.xlu0 %v1802_v63 }
0x17be   :  { %v2873_v57 = vpop.eup %2872 }
0x17bf   :  { %v1805_v58 = vsel %vm465_vm9, %v2873_v57, 0.0 }
0x17c9   :  { %1690 = vrot.lane.b32.xlu1 %v3399_v21, %s3650_s6 }
0x17d2   :  { %1567 = vrot.lane.b32.xlu0 %v3399_v21, %s3651_s27 }
0x17ed   :  { %1806 = vadd.xlane.f32.xlu1 %v1805_v58 }
0x17fe   :  { %1813 = vrot.lane.b32.xlu1 %v3399_v21, %s3652_s30 }
0x1835   :  { %v1558_v40 = vpop.xlane.xlu0 %1557 }
0x1836   :  { %2874 = vrcp.f32 %v1558_v40 }
0x1839   :  { %v1561_v5 = vpop.xlane.xlu1 %1560 }
0x183a   :  { %2876 = vrcp.f32 %v1561_v5 }
0x183d   :  { %v1681_v6 = vpop.xlane.xlu0 %1680 }
0x183e   :  { %2878 = vrcp.f32 %v1681_v6 }
0x1841   :  { %v1684_v7 = vpop.xlane.xlu1 %1683 }
0x1842   :  { %2880 = vrcp.f32 %v1684_v7 }
0x1843   :  { %v2875_v9 = vpop.eup %2874 }
0x1844   :  { %v1564_v15 = vmul.f32 %v2875_v9, %v2863_v30 }
0x1845   :  { %v1804_v8 = vpop.xlane.xlu0 %1803  ;;  %v1691_v16 = vpop.permute.xlu1 %1690 }
0x1846   :  { %v1696_v43 = vsel %vm241_vm2, %v1691_v16, 0  ;;  %2882 = vrcp.f32 %v1804_v8 }
0x1847   :  { %v2877_v10 = vpop.eup %2876 }
0x1848   :  { %v1565_v11 = vmul.f32 %v2877_v10, %v2865_v53 }
0x1849   :  { %v1568_v12 = vpop.permute.xlu0 %1567 }
0x184a   :  { %v1573_v13 = vsel %vm241_vm2, %v1568_v12, 0  ;;  %v1566_v18 = vpack.c.bf16 %v1565_v11, %v1564_v15 }
0x184b   :  { %2635 = vmatpush3.bf16.msra.mxu1 %v1573_v13  ;;  %v2879_v21 = vpop.eup %2878 }
0x184c   :  { %2646 = vmatprep.subr.bf16.mxu1 %v2925_v14  ;;  %v1687_v23 = vmul.f32 %v2879_v21, %v2867_v56 }
0x184e   :  { %2637 = vmatmul.mubr.msk.bf16.vlgmr.msra.gmra.mxu1 %vm461_vm8, %v1566_v18 }
0x184f   :  { %v2881_v20 = vpop.eup %2880  ;;  %2647 = vmatpush3.bf16.msra.mxu1 %v1696_v43  ;;  %2648 = vmatprep.mubr.msk.bf16.mxu1 %vm2926_vm6, %v2925_v14 }
0x1850   :  { %v1688_v22 = vmul.f32 %v2881_v20, %v2869_v59  ;;  %2658 = vmatprep.subr.bf16.mxu1 %v2925_v14 }
0x1852   :  { %v1689_v24 = vpack.c.bf16 %v1688_v22, %v1687_v23 }
0x1853   :  { %v2883_v17 = vpop.eup %2882 }
0x1854   :  { %v1810_v19 = vmul.f32 %v2883_v17, %v2871_v62 }
0x1856   :  { %2649 = vmatmul.mubr.msk.bf16.vlgmr.msra.gmra.mxu1 %vm461_vm8, %v1689_v24 }
0x1857   :  { %2660 = vmatprep.mubr.msk.bf16.mxu1 %vm2926_vm6, %v2925_v14 }
0x1876   :  { %v1807_v25 = vpop.xlane.xlu1 %1806 }
0x1877   :  { %2884 = vrcp.f32 %v1807_v25  ;;  %v2787_v25 = vld [vmem:[%s3617_s15 + $0x10] sm:$0xff]  }
0x187a   :  { %v1814_v26 = vpop.permute.xlu1 %1813 }
0x187b   :  { %v1819_v27 = vsel %vm241_vm2, %v1814_v26, 0 }
0x187c   :  { %2659 = vmatpush3.bf16.msra.mxu1 %v1819_v27 }
0x187d   :  { %2672 = vmatprep.subr.bf16.mxu1 %v2925_v14 }
0x1884   :  { %v2885_v46 = vpop.eup %2884 }
0x1885   :  { %v1811_v28 = vmul.f32 %v2885_v46, %v2873_v57 }
0x1887   :  { %v1812_v50 = vpack.c.bf16 %v1811_v28, %v1810_v19 }
0x1889   :  { %2661 = vmatmul.mubr.msk.bf16.vlgmr.msra.gmra.mxu1 %vm461_vm8, %v1812_v50 }
0x188a   :  { %2676 = vmatprep.mubr.msk.bf16.mxu1 %vm2926_vm6, %v2925_v14 }
0x190e   :  { %v1609_v29 = vpop.f32.mrf.mxu1 }
0x1910   :  { %v2638_v31 = vpop.f32.mrf.mxu1 }
0x1911   :  { %v2401_v31 = vld [vmem:[%s3615_s13 + $0x1] ss:$0 sm:$0xff] }
0x1912   :  { %v1612_v32 = vpop.f32.mrf.mxu1 }
0x1913   :  { %v2741_v34 = vpack.i.bf16 %v1612_v32, %v1609_v29 }
0x1914   :  { %v2639_v36 = vpop.f32.mrf.mxu1 }
0x1915   :  { %2742 = vrot.lane.b32.xlu1 %v2741_v34, %s3653_s29  ;;  %v2402_v36 = vld [vmem:[%s3616_s14 + $0x1] ss:$0 sm:$0xff] }
0x1916   :  { %v1732_v37 = vpop.f32.mrf.mxu1 }
0x1918   :  { %v2650_v38 = vpop.f32.mrf.mxu1 }
0x191a   :  { %v1735_v61 = vpop.f32.mrf.mxu1 }
0x191b   :  { %v2746_v41 = vpack.i.bf16 %v1735_v61, %v1732_v37 }
0x191c   :  { %v2651_v42 = vpop.f32.mrf.mxu1 }
0x191d   :  { %2747 = vrot.lane.b32.xlu0 %v2746_v41, %s3654_s1  ;;  %v2788_v42 = vld [vmem:[%s3619_s17 + $0x78] sm:$0xff]  }
0x1949   :  { %v1855_v47 = vpop.f32.mrf.mxu1 }
0x194b   :  { %v2662_v1 = vpop.f32.mrf.mxu1 }
0x194c   :  { %v2791_v1 = vld [vmem:[%s3619_s17 + $0x60] sm:$0xff]  }
0x194d   :  { %v1858_v48 = vpop.f32.mrf.mxu1 }
0x194e   :  { %v2751_v49 = vpack.i.bf16 %v1858_v48, %v1855_v47  ;;  %v2790_v47 = vld [vmem:[%s3619_s17 + $0x68] sm:$0xff]   ;;  %v2792_v48 = vld [vmem:[%s3619_s17 + $0x58] sm:$0xff]  }
0x194f   :  { %v2663_v30 = vpop.f32.mrf.mxu1 }
0x1950   :  { %2752 = vrot.lane.b32.xlu1 %v2751_v49, %s3655_s25  ;;  %v2793_v49 = vld [vmem:[%s3619_s17 + $0x50] sm:$0xff]   ;;  %v2794_v30 = vld [vmem:[%s3619_s17 + $0x48] sm:$0xff]  }
0x1987   :  { %v2743_v51 = vpop.permute.xlu1 %2742 }
0x1988   :  { %v2745_v53 = vunpack.i.h.bf16 %v2743_v51  ;;  %v2744_v54 = vunpack.i.l.bf16 %v2743_v51  ;;  %v2795_v51 = vld [vmem:[%s3619_s17 + $0x40] sm:$0xff]  }
0x198a   :  { %v1887_v60 = vsel %vm413_vm7, %v3447_v4, %v2745_v53  ;;  %v1886_v62 = vsel %vm413_vm7, %v3445_v3, %v2744_v54  ;;  %v2395_v3 = vld [vmem:[%s3614_s12 + $0x1] ss:$0 sm:$0xff] }
0x198f   :  { %v2748_v52 = vpop.permute.xlu0 %2747 }
0x1990   :  { %v2750_v56 = vunpack.i.h.bf16 %v2748_v52  ;;  %v2749_v35 = vunpack.i.l.bf16 %v2748_v52  ;;  %v2408_v52 = vld [vmem:[%s3618_s16 + $0x1] ss:$0 sm:$0xff] }
0x1992   :  { %v1888_v2 = vsel %vm931_vm10, %v1886_v62, %v2749_v35  ;;  %v1889_v55 = vsel %vm931_vm10, %v1887_v60, %v2750_v56 }
0x19c2   :  { %v2753_v59 = vpop.permute.xlu1 %2752 }
0x19c3   :  { %v2755_v63 = vunpack.i.h.bf16 %v2753_v59  ;;  %v2754_v0 = vunpack.i.l.bf16 %v2753_v59 }
0x19c5   :  { %v1890_v57 = vsel %vm934_vm11, %v1888_v2, %v2754_v0  ;;  %v1891_v58 = vsel %vm934_vm11, %v1889_v55, %v2755_v63 }
0x19c6   :  { %v1892_v40 = vpack.c.bf16 %v1891_v58, %v1890_v57 }
0x19c8   :  { %2669 = vmatmul.mubr.msk.bf16.vlgmr.msra.gmra.mxu0 %vm247_vm4, %v1892_v40 }
0x19c9   :  { %2696 = vmatprep.mubr.msk.bf16.mxu0 %vm2926_vm6, %v2925_v14  ;;  %2681 = vmatpush3.bf16.msra.mxu0 %v2788_v42 }
0x19ca   :  { %2682 = vmatprep.subr.bf16.mxu0 %v2925_v14 }
0x19cd   :  { %2683 = vmatpush3.bf16.msra.mxu0 %v2789_v44 }
0x19ce   :  { %2684 = vmatprep.subr.bf16.mxu0 %v2925_v14 }
0x19d1   :  { %2685 = vmatpush3.bf16.msra.mxu0 %v2790_v47 }
0x19d2   :  { %2686 = vmatprep.subr.bf16.mxu0 %v2925_v14 }
0x19d5   :  { %2687 = vmatpush3.bf16.msra.mxu0 %v2791_v1 }
0x19d6   :  { %2688 = vmatprep.subr.bf16.mxu0 %v2925_v14 }
0x19d9   :  { %2689 = vmatpush3.bf16.msra.mxu0 %v2792_v48 }
0x19da   :  { %2690 = vmatprep.subr.bf16.mxu0 %v2925_v14 }
0x19dd   :  { %2691 = vmatpush3.bf16.msra.mxu0 %v2793_v49 }
0x19de   :  { %2692 = vmatprep.subr.bf16.mxu0 %v2925_v14 }
0x19e1   :  { %2693 = vmatpush3.bf16.msra.mxu0 %v2794_v30 }
0x19e2   :  { %2694 = vmatprep.subr.bf16.mxu0 %v2925_v14 }
0x19e5   :  { %2695 = vmatpush3.bf16.msra.mxu0 %v2795_v51 }
0x1a88   :  { %v1955_v4 = vpop.f32.mrf.mxu0 }
0x1a89   :  { %v1956_v5 = vadd.f32 %v2395_v3, %v1955_v4 }
0x1a8a   :  { %v2670_v6 = vpop.f32.mrf.mxu0 }
0x1a8b   :  { %v3518_v7 = vadd.f32 %v1956_v5, %v3366_v39 }
0x1a8c   :  { %v1958_v8 = vpop.f32.mrf.mxu0 }
0x1a8d   :  { %v1959_v9 = vadd.f32 %v2395_v3, %v1958_v8  ;;  %v1968_v10 = vsel %vm247_vm4, %v3518_v7, 0.0 }
0x1a8e   :  { %1969 = vadd.xlane.f32.xlu0 %v1968_v10  ;;  %v2671_v11 = vpop.f32.mrf.mxu0 }
0x1a8f   :  { %v1963_v12 = vadd.f32 %v1959_v9, %v3371_v45  ;;  %v2786_v45 = vld [vmem:[%s3617_s15 + $0x18] sm:$0xff]   ;;  %v2431_v9 = vld [vmem:[%s3620_s18 + $0x1] ss:$0 sm:$0xff] }
0x1a90   :  { %2673 = vmatpush3.bf16.msra.mxu1 %v2786_v45  ;;  %v2796_v45 = vld [vmem:[%s3623_s21 + $0x8] sm:$0xff]  }
0x1a91   :  { %v1971_v13 = vsel %vm251_vm5, %v1963_v12, 0.0  ;;  %2674 = vmatprep.subr.bf16.mxu1 %v2925_v14 }
0x1a92   :  { %1972 = vadd.xlane.f32.xlu1 %v1971_v13 }
0x1a94   :  { %2675 = vmatpush3.bf16.msra.mxu1 %v2787_v25 }
0x1a95   :  { %2700 = vmatprep.subr.bf16.mxu1 %v2925_v14 }
0x1b17   :  { %v1970_v15 = vpop.xlane.xlu0 %1969 }
0x1b18   :  { %v1974_v16 = vmul.f32 0.03125, %v1970_v15 }
0x1b1a   :  { %v1976_v18 = vsub.f32 %v3518_v7, %v1974_v16 }
0x1b1b   :  { %v1973_v21 = vpop.xlane.xlu1 %1972 }
0x1b1c   :  { %v1975_v43 = vmul.f32 0.03125, %v1973_v21  ;;  %v1978_v39 = vmul.f32 %v1976_v18, %v1976_v18 }
0x1b1e   :  { %v1977_v20 = vsub.f32 %v1963_v12, %v1975_v43  ;;  %v1980_v22 = vsel %vm247_vm4, %v1978_v39, 0.0 }
0x1b1f   :  { %1981 = vadd.xlane.f32.xlu0 %v1980_v22 }
0x1b20   :  { %v1979_v23 = vmul.f32 %v1977_v20, %v1977_v20 }
0x1b22   :  { %v1983_v24 = vsel %vm251_vm5, %v1979_v23, 0.0 }
0x1b23   :  { %1984 = vadd.xlane.f32.xlu0 %v1983_v24 }
0x1ba8   :  { %v1982_v26 = vpop.xlane.xlu0 %1981 }
0x1ba9   :  { %v1986_v27 = vmul.f32 0.03125, %v1982_v26 }
0x1bab   :  { %v1988_v17 = vadd.f32 1e-05, %v1986_v27 }
0x1bac   :  { %v1985_v46 = vpop.xlane.xlu0 %1984 }
0x1bad   :  { %2886 = vrsqrt.f32 %v1988_v17  ;;  %v1987_v19 = vmul.f32 0.03125, %v1985_v46  ;;  %v2440_v46 = vld [vmem:[%s3621_s19] ss:$0 sm:$0xff] }
0x1baf   :  { %v1989_v28 = vadd.f32 1e-05, %v1987_v19 }
0x1bb1   :  { %2888 = vrsqrt.f32 %v1989_v28  ;;  %v2441_v28 = vld [vmem:[%s3622_s20] ss:$0 sm:$0xff] }
0x1bba   :  { %v2887_v50 = vpop.eup %2886 }
0x1bbb   :  { %v1992_v29 = vmul.f32 %v2887_v50, %v1976_v18 }
0x1bbd   :  { %v2000_v34 = vmul.f32 %v2401_v31, %v1992_v29 }
0x1bbe   :  { %v2889_v32 = vpop.eup %2888 }
0x1bbf   :  { %v1993_v33 = vmul.f32 %v2889_v32, %v1977_v20  ;;  %v2008_v38 = vadd.f32 %v2402_v36, %v2000_v34 }
0x1bc1   :  { %v2001_v37 = vmul.f32 %v2401_v31, %v1993_v33 }
0x1bc3   :  { %v2009_v61 = vadd.f32 %v2402_v36, %v2001_v37 }
0x1bc5   :  { %v2010_v41 = vpack.c.bf16 %v2009_v61, %v2008_v38 }
0x1bc7   :  { %2677 = vmatmul.mubr.msk.bf16.vlgmr.msra.gmra.mxu1 %vm247_vm4, %v2010_v41 }
0x1bc8   :  { %2704 = vmatprep.mubr.msk.bf16.mxu1 %vm2926_vm6, %v2925_v14  ;;  %2701 = vmatpush3.bf16.msra.mxu1 %v2796_v45 }
0x1bc9   :  { %2702 = vmatprep.subr.bf16.mxu1 %v2925_v14 }
0x1c87   :  { %v2073_v53 = vpop.f32.mrf.mxu1 }
0x1c88   :  { %v2074_v54 = vadd.f32 %v2408_v52, %v2073_v53 }
0x1c89   :  { %v2678_v56 = vpop.f32.mrf.mxu1 }
0x1c8a   :  { %v2412_v35 = vmul.f32 -1.702, %v2074_v54 }
0x1c8b   :  { %v2076_v59 = vpop.f32.mrf.mxu1 }
0x1c8c   :  { %v2084_v60 = vmul.f32 1.442695, %v2412_v35  ;;  %v2077_v62 = vadd.f32 %v2408_v52, %v2076_v59 }
0x1c8d   :  { %v2679_v63 = vpop.f32.mrf.mxu1 }
0x1c8e   :  { %2890 = vpow2.f32 %v2084_v60  ;;  %v2413_v0 = vmul.f32 -1.702, %v2077_v62 }
0x1c90   :  { %v2086_v2 = vmul.f32 1.442695, %v2413_v0 }
0x1c92   :  { %2892 = vpow2.f32 %v2086_v2 }
0x1c9b   :  { %v2891_v55 = vpop.eup %2890 }
0x1c9c   :  { %v2088_v57 = vadd.f32 1.0, %v2891_v55 }
0x1c9e   :  { %2894 = vrcp.f32 %v2088_v57 }
0x1c9f   :  { %v2893_v58 = vpop.eup %2892 }
0x1ca0   :  { %v2089_v40 = vadd.f32 1.0, %v2893_v58 }
0x1ca2   :  { %2896 = vrcp.f32 %v2089_v40 }
0x1cab   :  { %v2895_v3 = vpop.eup %2894 }
0x1cac   :  { %v2094_v5 = vmul.f32 %v2895_v3, %v2074_v54 }
0x1caf   :  { %v2897_v4 = vpop.eup %2896 }
0x1cb0   :  { %v2095_v6 = vmul.f32 %v2897_v4, %v2077_v62 }
0x1cb2   :  { %v2096_v8 = vpack.c.bf16 %v2095_v6, %v2094_v5 }
0x1cb4   :  { %2697 = vmatmul.mubr.bf16.vlgmr.msra.gmra.mxu0 %v2096_v8 }
0x1d74   :  { %v2204_v10 = vpop.f32.mrf.mxu0 }
0x1d75   :  { %v2205_v11 = vadd.f32 %v2431_v9, %v2204_v10 }
0x1d76   :  { %v2698_v12 = vpop.f32.mrf.mxu0 }
0x1d77   :  { %v2210_v13 = vadd.f32 %v2205_v11, %v3518_v7  ;;  %v2797_v7 = vld [vmem:[%s3623_s21] sm:$0xff]   ;;  %s2941_s21 = smov [#allocation2]  }
0x1d78   :  { %v2207_v15 = vpop.f32.mrf.mxu0  ;;  %2703 = vmatpush3.bf16.msra.mxu1 %v2797_v7  ;;  %s2311_s24 = sshll.u32 %s2941_s21, 4  ;;  %s2312_s24 = int_to_ptr.vmem [resolvable:$true] %s2311_s24 }
0x1d79   :  { %v2212_v16 = vrot.slane %v2210_v13, 4  ;;  %s2902_s13 = scalar_lea.vmem %s2312_s24, 32  ;;  %p2907_p1 = scmp.lt.s32.totalorder %s2312_s24, %s2312_s24 }
0x1d7a   :  { %v2699_v18 = vpop.f32.mrf.mxu0  ;;  %p2903_p0 = scmp.ne.s32.totalorder %s2312_s24, %s2902_s13  ;;  %p2908_p2 = scmp.lt.s32.totalorder %s2902_s13, %s2902_s13 }
0x1d7b   :  { %v2214_v21 = vsel %vm239_vm1, %v2210_v13, %v2212_v16 }
0x1d7c   :  { %v2217_v43 = vsel %vm251_vm5, %v2214_v21, 0.0  ;;  %p2909_p3 = por %p2908_p2, %p2907_p1 }
0x1d7d   :  { %2218 = vadd.xlane.f32.xlu0 %v2217_v43 }
0x1d7e   :  { %p2910_p4 = pnand %p2909_p3, %p2903_p0 }
0x1e06   :  { %v2219_v39 = vpop.xlane.xlu0 %2218 }
0x1e07   :  { %v2220_v20 = vmul.f32 0.03125, %v2219_v39 }
0x1e09   :  { %v2221_v22 = vsub.f32 %v2214_v21, %v2220_v20 }
0x1e0b   :  { %v2222_v23 = vmul.f32 %v2221_v22, %v2221_v22 }
0x1e0d   :  { %v2223_v24 = vsel %vm251_vm5, %v2222_v23, 0.0 }
0x1e0e   :  { %2224 = vadd.xlane.f32.xlu1 %v2223_v24 }
0x1e97   :  { %v2225_v25 = vpop.xlane.xlu1 %2224 }
0x1e98   :  { %v2226_v26 = vmul.f32 0.03125, %v2225_v25 }
0x1e9a   :  { %v2227_v27 = vadd.f32 1e-05, %v2226_v26 }
0x1e9c   :  { %2898 = vrsqrt.f32 %v2227_v27 }
0x1ea9   :  { %v2899_v17 = vpop.eup %2898 }
0x1eaa   :  { %v2229_v19 = vmul.f32 %v2899_v17, %v2221_v22 }
0x1eac   :  { %v2236_v50 = vmul.f32 %v2440_v46, %v2229_v19 }
0x1eae   :  { %v2243_v29 = vadd.f32 %v2441_v28, %v2236_v50 }
0x1eb0   :  { %v2244_v31 = vpack.c.bf16 %v2243_v29, %v2243_v29 }
0x1eb2   :  { %2705 = vmatmul.mubr.msk.bf16.vlgmr.msra.gmra.mxu1 %vm247_vm4, %v2244_v31 }
0x1f72   :  { %v2298_v14 = vpop.f32.mrf.mxu1 }
0x1f73   :  { %2304 = vst [vmem:[#allocation2] sm:$0x3] %v2298_v14 }
0x1f74   :  { %v2706_v32 = vpop.f32.mrf.mxu1 }
0x1f75   :  { %2913 = shalt.err (!%p2910_p4)
}
0x1f76   :  { %2314 = dma.vmem_to_hbm [thread:$0]  %s2312_s24, 32, %s3624_s22, [#allocation3]   ;;  %v2301_v33 = vpop.f32.mrf.mxu1 }
0x1f78   :  { %v2707_v34 = vpop.f32.mrf.mxu1 }
0x1f79   :  { %2922 = dma.done.wait [#allocation3], 32  }
0x1f7a   :  { %2923 = vsyncadd [#allocation3], 4294967264 }
0x1f7b   :  { %2318 = vsyncpa [#allocation3], 1 }

</bundles_post_ra>
